<compile_context>
chip_gen: v7x
topology: tpu7x:2x2x1
jax: 0.10.0
libtpu: 0.0.40
codegen_flags: <defaults>
</compile_context>

<pallas_src>
import functools

import jax
import jax.numpy as jnp
from jax.experimental import pallas as pl
from jax.experimental.pallas import tpu as pltpu


def _round_up(x, m):
    return (x + m - 1) // m * m


def _gru_kernel(len_ref, x_ref, w_i_ref, w_h_ref, b_ref, w_fc_ref, b_fc_ref,
                out_ref, gi_r_s, gi_z_s, gi_n_s, *, seq_len, batch_block):
    """One invocation = one batch block.

    Pass 1: hoisted input projection for all T timesteps (one matmul / gate).
    Pass 2: serial GRU recurrence with masked (packed-sequence) updates.
    Tail  : lane-dense FC head on the final hidden state.
    """
    T = seq_len
    Bb = batch_block

    x = x_ref[...]                                    # (T*Bb, H) bf16, time-major
    cdt = x.dtype                                     # MXU operand dtype (bf16)

    # ---- Pass 1: input projection has no time dependence -> one big matmul
    # per gate, results stay resident in VMEM scratch (gate-aligned, no
    # lane-axis slicing). r/z biases are pre-folded (b_ih + b_hh).
    gi_r_s[...] = jnp.dot(x, w_i_ref[0], preferred_element_type=jnp.float32) + b_ref[0]
    gi_z_s[...] = jnp.dot(x, w_i_ref[1], preferred_element_type=jnp.float32) + b_ref[1]
    gi_n_s[...] = jnp.dot(x, w_i_ref[2], preferred_element_type=jnp.float32) + b_ref[2]

    w_hr = w_h_ref[0]                                 # (H, H) bf16
    w_hz = w_h_ref[1]
    w_hn = w_h_ref[2]
    b_hn = b_ref[3]                                   # (1, H) f32 (stays inside r*(...))
    lens = len_ref[...]                               # (Bb, 1) int32 — read once, not per step

    # ---- Pass 2: serial recurrence; only the small recurrent matmuls remain.
    def step(t, h):
        row = pl.multiple_of(t * Bb, Bb)              # Bb is a multiple of 8 -> aligned
        gr = gi_r_s[pl.ds(row, Bb), :]
        gz = gi_z_s[pl.ds(row, Bb), :]
        gn = gi_n_s[pl.ds(row, Bb), :]
        hb = h.astype(cdt)                            # bf16 operand for the MXU
        r = jax.nn.sigmoid(gr + jnp.dot(hb, w_hr, preferred_element_type=jnp.float32))
        z = jax.nn.sigmoid(gz + jnp.dot(hb, w_hz, preferred_element_type=jnp.float32))
        n = jnp.tanh(gn + r * (jnp.dot(hb, w_hn, preferred_element_type=jnp.float32) + b_hn))
        h_new = (1.0 - z) * n + z * h                 # f32 gate math / blend (v5e-safe)
        # Only advance rows still inside their valid length (pack_padded).
        return jnp.where(t < lens, h_new, h)

    h0 = jnp.zeros((Bb, w_hr.shape[0]), jnp.float32)
    h_final = jax.lax.fori_loop(0, T, step, h0, unroll=True)

    # ---- FC head: lane-dense (item_num padded to 128-lane multiple).
    out_ref[...] = (
        jnp.dot(h_final.astype(cdt), w_fc_ref[...], preferred_element_type=jnp.float32)
        + b_fc_ref[...]
    )


def gru_forward(states, len_states, params, *, batch_block=None):
    """states: (B, T) int32 item ids; len_states: (B,) int32 valid lengths."""
    emb_table = params["emb"]            # (item_num + 1, H)
    w_ih = params["w_ih"]                # (3H, H)   gate order: r, z, n
    w_hh = params["w_hh"]                # (3H, H)
    b_ih = params["b_ih"]                # (3H,)
    b_hh = params["b_hh"]                # (3H,)
    w_fc = params["w_fc"]                # (item_num, H)
    b_fc = params["b_fc"]                # (item_num,)

    B, T = states.shape
    H = emb_table.shape[1]
    item_num = w_fc.shape[0]
    assert T >= 1, "empty sequences: nothing to run"

    # Pad batch to a sublane multiple so every in-kernel slice is 8-aligned.
    Bp = _round_up(B, 8)
    if batch_block is None:
        batch_block = Bp                 # one block; for v7x use Bp // 2 to use both TCs
    assert Bp % batch_block == 0 and batch_block % 8 == 0
    nb = Bp // batch_block
    Bb = batch_block

    states_p = jnp.pad(states.astype(jnp.int32), ((0, Bp - B), (0, 0)))
    lens_p = jnp.pad(len_states.astype(jnp.int32), (0, Bp - B))     # pad rows: len 0

    # Embedding gather directly in time-major block layout: only the tiny int32
    # index matrix is transposed, the (T*Bb, H) activation slab is gathered in
    # place (no extra HBM round-trip of a transposed activation tensor).
    # TODO(synk): at large scale, fold the gather into the kernel via scalar
    # prefetch of `states` + manual row DMAs from the HBM embedding table.
    emb_bf16 = emb_table.astype(jnp.bfloat16)
    idx = states_p.reshape(nb, Bb, T).transpose(0, 2, 1)            # (nb, T, Bb)
    x = jnp.take(emb_bf16, idx, axis=0).reshape(nb, T * Bb, H)      # (nb, T*Bb, H) bf16
    lens2 = lens_p.reshape(nb, Bb, 1)

    # Gate-aligned, pre-transposed, bf16 weights: (3, H, H) per projection.
    def split_gates(w):                  # (3H, H) -> (3, H, H), each transposed
        return jnp.stack([w[g * H:(g + 1) * H, :].T for g in range(3)], axis=0)

    w_i = split_gates(w_ih).astype(jnp.bfloat16)
    w_h = split_gates(w_hh).astype(jnp.bfloat16)

    # Folded biases, order [b_r, b_z, b_in, b_hn]:
    #   r/z: input+hidden biases merged; n: b_in folded into gi, b_hn stays
    #   inside the reset-gated hidden term (PyTorch GRU semantics).
    b_gates = jnp.stack([
        b_ih[0 * H:1 * H] + b_hh[0 * H:1 * H],
        b_ih[1 * H:2 * H] + b_hh[1 * H:2 * H],
        b_ih[2 * H:3 * H],
        b_hh[2 * H:3 * H],
    ], axis=0).astype(jnp.float32).reshape(4, 1, H)

    # Lane-dense FC head: pad item_num up to a 128-lane multiple.
    Np = _round_up(item_num, 128)
    w_fc_t = jnp.pad(w_fc.T, ((0, 0), (0, Np - item_num))).astype(jnp.bfloat16)
    b_fc_p = jnp.pad(b_fc, (0, Np - item_num)).astype(jnp.float32).reshape(1, Np)

    kernel = functools.partial(_gru_kernel, seq_len=T, batch_block=Bb)

    # TODO(synk): at realistic item_num, tile W_fc over a second grid axis (or
    # run the head as a separate matmul) and set vmem_limit_bytes with headroom
    # for v7x's 64 MiB VMEM; trivially fits at these shapes.
    out = pl.pallas_call(
        kernel,
        out_shape=jax.ShapeDtypeStruct((nb, Bb, Np), jnp.float32),
        grid=(nb,),
        in_specs=[
            pl.BlockSpec((None, Bb, 1), lambda b: (b, 0, 0)),        # lens
            pl.BlockSpec((None, T * Bb, H), lambda b: (b, 0, 0)),    # x, time-major
            pl.BlockSpec((3, H, H), lambda b: (0, 0, 0)),            # W_i^T per gate
            pl.BlockSpec((3, H, H), lambda b: (0, 0, 0)),            # W_h^T per gate
            pl.BlockSpec((4, 1, H), lambda b: (0, 0, 0)),            # folded biases
            pl.BlockSpec((H, Np), lambda b: (0, 0)),                 # W_fc^T (lane padded)
            pl.BlockSpec((1, Np), lambda b: (0, 0)),                 # b_fc (lane padded)
        ],
        out_specs=pl.BlockSpec((None, Bb, Np), lambda b: (b, 0, 0)),
        scratch_shapes=[pltpu.VMEM((T * Bb, H), jnp.float32)] * 3,   # gi_r, gi_z, gi_n
        compiler_params=pltpu.CompilerParams(
            dimension_semantics=("parallel",)),   # batch blocks independent (v7x 2 TCs)
    )(lens2, x, w_i, w_h, b_gates, w_fc_t, b_fc_p)

    return out.reshape(Bp, Np)[:B, :item_num]


def gru_forward_ref(states, len_states, params):
    """Pure-JAX reference mirroring torch semantics and the kernel's bf16 MXU
    operand casts (f32 accumulation / gate math), for correctness checking."""
    to_bf = lambda a: a.astype(jnp.bfloat16).astype(jnp.float32)
    emb_t = to_bf(params["emb"])
    w_ih = to_bf(params["w_ih"])
    w_hh = to_bf(params["w_hh"])
    w_fc = to_bf(params["w_fc"])
    b_ih = params["b_ih"].astype(jnp.float32)
    b_hh = params["b_hh"].astype(jnp.float32)
    b_fc = params["b_fc"].astype(jnp.float32)

    x = jnp.take(emb_t, states, axis=0)              # (B, T, H)
    B, T, H = x.shape
    h = jnp.zeros((B, H), jnp.float32)
    for t in range(T):
        xt = x[:, t, :]
        gi = xt @ w_ih.T + b_ih
        gh = to_bf(h) @ w_hh.T + b_hh
        r = jax.nn.sigmoid(gi[:, :H] + gh[:, :H])
        z = jax.nn.sigmoid(gi[:, H:2 * H] + gh[:, H:2 * H])
        n = jnp.tanh(gi[:, 2 * H:] + r * gh[:, 2 * H:])
        h_new = (1.0 - z) * n + z * h
        h = jnp.where((t < len_states)[:, None], h_new, h)
    return to_bf(h) @ w_fc.T + b_fc


def init_params(key, hidden_size, item_num):
    ks = jax.random.split(key, 7)
    H = hidden_size
    bound = 1.0 / jnp.sqrt(H)
    return {
        # nn.init.normal_(weight, 0, 0.01)
        "emb": 0.01 * jax.random.normal(ks[0], (item_num + 1, H), jnp.float32),
        # nn.GRU default init: U(-1/sqrt(H), 1/sqrt(H))
        "w_ih": jax.random.uniform(ks[1], (3 * H, H), jnp.float32, -bound, bound),
        "w_hh": jax.random.uniform(ks[2], (3 * H, H), jnp.float32, -bound, bound),
        "b_ih": jax.random.uniform(ks[3], (3 * H,), jnp.float32, -bound, bound),
        "b_hh": jax.random.uniform(ks[4], (3 * H,), jnp.float32, -bound, bound),
        # nn.Linear default init
        "w_fc": jax.random.uniform(ks[5], (item_num, H), jnp.float32, -bound, bound),
        "b_fc": jax.random.uniform(ks[6], (item_num,), jnp.float32, -bound, bound),
    }


if __name__ == "__main__":
    hidden_size = 32
    item_num = 50
    state_size = 8      # max sequence length T
    batch = 4

    key = jax.random.PRNGKey(0)
    pkey, skey, lkey = jax.random.split(key, 3)
    params = init_params(pkey, hidden_size, item_num)

    states = jax.random.randint(skey, (batch, state_size), 0, item_num + 1,
                                dtype=jnp.int32)
    len_states = jax.random.randint(lkey, (batch,), 1, state_size + 1,
                                    dtype=jnp.int32)

    out = jax.block_until_ready(gru_forward(states, len_states, params))
    ref = gru_forward_ref(states, len_states, params)

    assert out.shape == (batch, item_num)
    max_err = jnp.max(jnp.abs(out - ref))
    assert jnp.allclose(out, ref, atol=1e-4, rtol=1e-4), f"max err {max_err}"

    print("KERNEL_OK")
</pallas_src>

<mosaic_0001>
module attributes {stable_mosaic.version = 11 : i64} {
  func.func @_gru_kernel(%arg0: i32, %arg1: memref<1x8x1xi32, #tpu.memory_space<vmem>>, %arg2: memref<1x64x32xbf16, #tpu.memory_space<vmem>>, %arg3: memref<3x32x32xbf16, #tpu.memory_space<vmem>>, %arg4: memref<3x32x32xbf16, #tpu.memory_space<vmem>>, %arg5: memref<4x1x32xf32, #tpu.memory_space<vmem>>, %arg6: memref<32x128xbf16, #tpu.memory_space<vmem>>, %arg7: memref<1x128xf32, #tpu.memory_space<vmem>>, %arg8: memref<1x8x128xf32, #tpu.memory_space<vmem>>, %arg9: memref<64x32xf32, #tpu.memory_space<vmem>>, %arg10: memref<64x32xf32, #tpu.memory_space<vmem>>, %arg11: memref<64x32xf32, #tpu.memory_space<vmem>>) attributes {dimension_semantics = [#tpu.dimension_semantics<parallel>], iteration_bounds = array<i64: 1>, scalar_prefetch = 0 : i64, scratch_operands = 3 : i64, tpu.core_type = #tpu.core_type<tc>, window_params = [{transform_indices = @transform_0, window_bounds = array<i64: 1, 8, 1>}, {transform_indices = @transform_1, window_bounds = array<i64: 1, 64, 32>}, {pipeline_mode = #tpu.pipeline_mode<synchronous>, transform_indices = @transform_2, window_bounds = array<i64: 3, 32, 32>}, {pipeline_mode = #tpu.pipeline_mode<synchronous>, transform_indices = @transform_3, window_bounds = array<i64: 3, 32, 32>}, {pipeline_mode = #tpu.pipeline_mode<synchronous>, transform_indices = @transform_4, window_bounds = array<i64: 4, 1, 32>}, {pipeline_mode = #tpu.pipeline_mode<synchronous>, transform_indices = @transform_5, window_bounds = array<i64: 32, 128>}, {pipeline_mode = #tpu.pipeline_mode<synchronous>, transform_indices = @transform_6, window_bounds = array<i64: 1, 128>}, {transform_indices = @transform_7, window_bounds = array<i64: 1, 8, 128>}]} {
    %c0 = arith.constant 0 : index
    %c0_0 = arith.constant 0 : index
    %c0_1 = arith.constant 0 : index
    %0 = vector.load %arg2[%c0, %c0_0, %c0_1] : memref<1x64x32xbf16, #tpu.memory_space<vmem>>, vector<1x64x32xbf16>
    %1 = vector.shape_cast %0 : vector<1x64x32xbf16> to vector<64x32xbf16>
    %c0_2 = arith.constant 0 : index
    %c0_3 = arith.constant 0 : index
    %c0_4 = arith.constant 0 : index
    %2 = vector.load %arg3[%c0_2, %c0_3, %c0_4] : memref<3x32x32xbf16, #tpu.memory_space<vmem>>, vector<1x32x32xbf16>
    %3 = vector.shape_cast %2 : vector<1x32x32xbf16> to vector<32x32xbf16>
    %cst = arith.constant dense<0.000000e+00> : vector<64x32xf32>
    %4 = tpu.matmul %1, %3, %cst {dimension_numbers = #tpu.dot_dimension_numbers<[1], [0], [0], [1], [0, 0, 1, 1], [], []>} : vector<64x32xbf16>, vector<32x32xbf16>, vector<64x32xf32> -> vector<64x32xf32>
    %c0_5 = arith.constant 0 : index
    %c0_6 = arith.constant 0 : index
    %c0_7 = arith.constant 0 : index
    %5 = vector.load %arg5[%c0_5, %c0_6, %c0_7] : memref<4x1x32xf32, #tpu.memory_space<vmem>>, vector<1x1x32xf32>
    %6 = vector.shape_cast %5 : vector<1x1x32xf32> to vector<1x32xf32>
    %7 = vector.broadcast %6 : vector<1x32xf32> to vector<64x32xf32>
    %8 = arith.addf %4, %7 : vector<64x32xf32>
    %c0_8 = arith.constant 0 : index
    %c0_9 = arith.constant 0 : index
    %9 = vector.load %arg9[%c0_8, %c0_9] : memref<64x32xf32, #tpu.memory_space<vmem>>, vector<64x32xf32>
    tpu.vector_store %arg9[%c0_8, %c0_9], %8 {strides = array<i32>} : memref<64x32xf32, #tpu.memory_space<vmem>>, vector<64x32xf32>,
    %c1 = arith.constant 1 : index
    %c0_10 = arith.constant 0 : index
    %c0_11 = arith.constant 0 : index
    %10 = vector.load %arg3[%c1, %c0_10, %c0_11] : memref<3x32x32xbf16, #tpu.memory_space<vmem>>, vector<1x32x32xbf16>
    %11 = vector.shape_cast %10 : vector<1x32x32xbf16> to vector<32x32xbf16>
    %cst_12 = arith.constant dense<0.000000e+00> : vector<64x32xf32>
    %12 = tpu.matmul %1, %11, %cst_12 {dimension_numbers = #tpu.dot_dimension_numbers<[1], [0], [0], [1], [0, 0, 1, 1], [], []>} : vector<64x32xbf16>, vector<32x32xbf16>, vector<64x32xf32> -> vector<64x32xf32>
    %c1_13 = arith.constant 1 : index
    %c0_14 = arith.constant 0 : index
    %c0_15 = arith.constant 0 : index
    %13 = vector.load %arg5[%c1_13, %c0_14, %c0_15] : memref<4x1x32xf32, #tpu.memory_space<vmem>>, vector<1x1x32xf32>
    %14 = vector.shape_cast %13 : vector<1x1x32xf32> to vector<1x32xf32>
    %15 = vector.broadcast %14 : vector<1x32xf32> to vector<64x32xf32>
    %16 = arith.addf %12, %15 : vector<64x32xf32>
    %c0_16 = arith.constant 0 : index
    %c0_17 = arith.constant 0 : index
    %17 = vector.load %arg10[%c0_16, %c0_17] : memref<64x32xf32, #tpu.memory_space<vmem>>, vector<64x32xf32>
    tpu.vector_store %arg10[%c0_16, %c0_17], %16 {strides = array<i32>} : memref<64x32xf32, #tpu.memory_space<vmem>>, vector<64x32xf32>,
    %c2 = arith.constant 2 : index
    %c0_18 = arith.constant 0 : index
    %c0_19 = arith.constant 0 : index
    %18 = vector.load %arg3[%c2, %c0_18, %c0_19] : memref<3x32x32xbf16, #tpu.memory_space<vmem>>, vector<1x32x32xbf16>
    %19 = vector.shape_cast %18 : vector<1x32x32xbf16> to vector<32x32xbf16>
    %cst_20 = arith.constant dense<0.000000e+00> : vector<64x32xf32>
    %20 = tpu.matmul %1, %19, %cst_20 {dimension_numbers = #tpu.dot_dimension_numbers<[1], [0], [0], [1], [0, 0, 1, 1], [], []>} : vector<64x32xbf16>, vector<32x32xbf16>, vector<64x32xf32> -> vector<64x32xf32>
    %c2_21 = arith.constant 2 : index
    %c0_22 = arith.constant 0 : index
    %c0_23 = arith.constant 0 : index
    %21 = vector.load %arg5[%c2_21, %c0_22, %c0_23] : memref<4x1x32xf32, #tpu.memory_space<vmem>>, vector<1x1x32xf32>
    %22 = vector.shape_cast %21 : vector<1x1x32xf32> to vector<1x32xf32>
    %23 = vector.broadcast %22 : vector<1x32xf32> to vector<64x32xf32>
    %24 = arith.addf %20, %23 : vector<64x32xf32>
    %c0_24 = arith.constant 0 : index
    %c0_25 = arith.constant 0 : index
    %25 = vector.load %arg11[%c0_24, %c0_25] : memref<64x32xf32, #tpu.memory_space<vmem>>, vector<64x32xf32>
    tpu.vector_store %arg11[%c0_24, %c0_25], %24 {strides = array<i32>} : memref<64x32xf32, #tpu.memory_space<vmem>>, vector<64x32xf32>,
    %c0_26 = arith.constant 0 : index
    %c0_27 = arith.constant 0 : index
    %c0_28 = arith.constant 0 : index
    %26 = vector.load %arg4[%c0_26, %c0_27, %c0_28] : memref<3x32x32xbf16, #tpu.memory_space<vmem>>, vector<1x32x32xbf16>
    %27 = vector.shape_cast %26 : vector<1x32x32xbf16> to vector<32x32xbf16>
    %c1_29 = arith.constant 1 : index
    %c0_30 = arith.constant 0 : index
    %c0_31 = arith.constant 0 : index
    %28 = vector.load %arg4[%c1_29, %c0_30, %c0_31] : memref<3x32x32xbf16, #tpu.memory_space<vmem>>, vector<1x32x32xbf16>
    %29 = vector.shape_cast %28 : vector<1x32x32xbf16> to vector<32x32xbf16>
    %c2_32 = arith.constant 2 : index
    %c0_33 = arith.constant 0 : index
    %c0_34 = arith.constant 0 : index
    %30 = vector.load %arg4[%c2_32, %c0_33, %c0_34] : memref<3x32x32xbf16, #tpu.memory_space<vmem>>, vector<1x32x32xbf16>
    %31 = vector.shape_cast %30 : vector<1x32x32xbf16> to vector<32x32xbf16>
    %c3 = arith.constant 3 : index
    %c0_35 = arith.constant 0 : index
    %c0_36 = arith.constant 0 : index
    %32 = vector.load %arg5[%c3, %c0_35, %c0_36] : memref<4x1x32xf32, #tpu.memory_space<vmem>>, vector<1x1x32xf32>
    %33 = vector.shape_cast %32 : vector<1x1x32xf32> to vector<1x32xf32>
    %c0_37 = arith.constant 0 : index
    %c0_38 = arith.constant 0 : index
    %c0_39 = arith.constant 0 : index
    %34 = vector.load %arg1[%c0_37, %c0_38, %c0_39] : memref<1x8x1xi32, #tpu.memory_space<vmem>>, vector<1x8x1xi32>
    %35 = vector.shape_cast %34 : vector<1x8x1xi32> to vector<8x1xi32>
    %cst_40 = arith.constant 0.000000e+00 : f32
    %36 = vector.broadcast %cst_40 : f32 to vector<8x32xf32>
    %c0_i32 = arith.constant 0 : i32
    %c8_i32 = arith.constant 8 : i32
    %37 = arith.muli %c0_i32, %c8_i32 : i32
    %38 = tpu.assume_multiple %37, 8 : i32
    %39 = arith.index_cast %38 : i32 to index
    %c0_41 = arith.constant 0 : index
    %40 = vector.load %arg9[%39, %c0_41] : memref<64x32xf32, #tpu.memory_space<vmem>>, vector<8x32xf32>
    %41 = arith.index_cast %38 : i32 to index
    %c0_42 = arith.constant 0 : index
    %42 = vector.load %arg10[%41, %c0_42] : memref<64x32xf32, #tpu.memory_space<vmem>>, vector<8x32xf32>
    %43 = arith.index_cast %38 : i32 to index
    %c0_43 = arith.constant 0 : index
    %44 = vector.load %arg11[%43, %c0_43] : memref<64x32xf32, #tpu.memory_space<vmem>>, vector<8x32xf32>
    %45 = arith.truncf %36 : vector<8x32xf32> to vector<8x32xbf16>
    %cst_44 = arith.constant dense<0.000000e+00> : vector<8x32xf32>
    %46 = tpu.matmul %45, %27, %cst_44 {dimension_numbers = #tpu.dot_dimension_numbers<[1], [0], [0], [1], [0, 0, 1, 1], [], []>} : vector<8x32xbf16>, vector<32x32xbf16>, vector<8x32xf32> -> vector<8x32xf32>
    %47 = arith.addf %40, %46 : vector<8x32xf32>
    %48 = arith.negf %47 : vector<8x32xf32>
    %49 = math.exp %48 : vector<8x32xf32>
    %cst_45 = arith.constant 1.000000e+00 : f32
    %50 = vector.broadcast %cst_45 : f32 to vector<8x32xf32>
    %51 = arith.addf %50, %49 : vector<8x32xf32>
    %52 = arith.divf %50, %51 : vector<8x32xf32>
    %cst_46 = arith.constant dense<0.000000e+00> : vector<8x32xf32>
    %53 = tpu.matmul %45, %29, %cst_46 {dimension_numbers = #tpu.dot_dimension_numbers<[1], [0], [0], [1], [0, 0, 1, 1], [], []>} : vector<8x32xbf16>, vector<32x32xbf16>, vector<8x32xf32> -> vector<8x32xf32>
    %54 = arith.addf %42, %53 : vector<8x32xf32>
    %55 = arith.negf %54 : vector<8x32xf32>
    %56 = math.exp %55 : vector<8x32xf32>
    %cst_47 = arith.constant 1.000000e+00 : f32
    %57 = vector.broadcast %cst_47 : f32 to vector<8x32xf32>
    %58 = arith.addf %57, %56 : vector<8x32xf32>
    %59 = arith.divf %57, %58 : vector<8x32xf32>
    %cst_48 = arith.constant dense<0.000000e+00> : vector<8x32xf32>
    %60 = tpu.matmul %45, %31, %cst_48 {dimension_numbers = #tpu.dot_dimension_numbers<[1], [0], [0], [1], [0, 0, 1, 1], [], []>} : vector<8x32xbf16>, vector<32x32xbf16>, vector<8x32xf32> -> vector<8x32xf32>
    %61 = vector.broadcast %33 : vector<1x32xf32> to vector<8x32xf32>
    %62 = arith.addf %60, %61 : vector<8x32xf32>
    %63 = arith.mulf %52, %62 : vector<8x32xf32>
    %64 = arith.addf %44, %63 : vector<8x32xf32>
    %65 = math.tanh %64 : vector<8x32xf32>
    %cst_49 = arith.constant 1.000000e+00 : f32
    %66 = vector.broadcast %cst_49 : f32 to vector<8x32xf32>
    %67 = arith.subf %66, %59 : vector<8x32xf32>
    %68 = arith.mulf %67, %65 : vector<8x32xf32>
    %69 = arith.mulf %59, %36 : vector<8x32xf32>
    %70 = arith.addf %68, %69 : vector<8x32xf32>
    %71 = vector.broadcast %c0_i32 : i32 to vector<8x1xi32>
    %72 = arith.cmpi slt, %71, %35 : vector<8x1xi32>
    %73 = vector.shape_cast %72 : vector<8x1xi1> to vector<8x1xi1>
    %74 = vector.broadcast %73 : vector<8x1xi1> to vector<8x32xi1>
    %75 = arith.select %74, %70, %36 : vector<8x32xi1>, vector<8x32xf32>
    %c1_i32 = arith.constant 1 : i32
    %c8_i32_50 = arith.constant 8 : i32
    %76 = arith.muli %c1_i32, %c8_i32_50 : i32
    %77 = tpu.assume_multiple %76, 8 : i32
    %78 = arith.index_cast %77 : i32 to index
    %c0_51 = arith.constant 0 : index
    %79 = vector.load %arg9[%78, %c0_51] : memref<64x32xf32, #tpu.memory_space<vmem>>, vector<8x32xf32>
    %80 = arith.index_cast %77 : i32 to index
    %c0_52 = arith.constant 0 : index
    %81 = vector.load %arg10[%80, %c0_52] : memref<64x32xf32, #tpu.memory_space<vmem>>, vector<8x32xf32>
    %82 = arith.index_cast %77 : i32 to index
    %c0_53 = arith.constant 0 : index
    %83 = vector.load %arg11[%82, %c0_53] : memref<64x32xf32, #tpu.memory_space<vmem>>, vector<8x32xf32>
    %84 = arith.truncf %75 : vector<8x32xf32> to vector<8x32xbf16>
    %cst_54 = arith.constant dense<0.000000e+00> : vector<8x32xf32>
    %85 = tpu.matmul %84, %27, %cst_54 {dimension_numbers = #tpu.dot_dimension_numbers<[1], [0], [0], [1], [0, 0, 1, 1], [], []>} : vector<8x32xbf16>, vector<32x32xbf16>, vector<8x32xf32> -> vector<8x32xf32>
    %86 = arith.addf %79, %85 : vector<8x32xf32>
    %87 = arith.negf %86 : vector<8x32xf32>
    %88 = math.exp %87 : vector<8x32xf32>
    %cst_55 = arith.constant 1.000000e+00 : f32
    %89 = vector.broadcast %cst_55 : f32 to vector<8x32xf32>
    %90 = arith.addf %89, %88 : vector<8x32xf32>
    %91 = arith.divf %89, %90 : vector<8x32xf32>
    %cst_56 = arith.constant dense<0.000000e+00> : vector<8x32xf32>
    %92 = tpu.matmul %84, %29, %cst_56 {dimension_numbers = #tpu.dot_dimension_numbers<[1], [0], [0], [1], [0, 0, 1, 1], [], []>} : vector<8x32xbf16>, vector<32x32xbf16>, vector<8x32xf32> -> vector<8x32xf32>
    %93 = arith.addf %81, %92 : vector<8x32xf32>
    %94 = arith.negf %93 : vector<8x32xf32>
    %95 = math.exp %94 : vector<8x32xf32>
    %cst_57 = arith.constant 1.000000e+00 : f32
    %96 = vector.broadcast %cst_57 : f32 to vector<8x32xf32>
    %97 = arith.addf %96, %95 : vector<8x32xf32>
    %98 = arith.divf %96, %97 : vector<8x32xf32>
    %cst_58 = arith.constant dense<0.000000e+00> : vector<8x32xf32>
    %99 = tpu.matmul %84, %31, %cst_58 {dimension_numbers = #tpu.dot_dimension_numbers<[1], [0], [0], [1], [0, 0, 1, 1], [], []>} : vector<8x32xbf16>, vector<32x32xbf16>, vector<8x32xf32> -> vector<8x32xf32>
    %100 = vector.broadcast %33 : vector<1x32xf32> to vector<8x32xf32>
    %101 = arith.addf %99, %100 : vector<8x32xf32>
    %102 = arith.mulf %91, %101 : vector<8x32xf32>
    %103 = arith.addf %83, %102 : vector<8x32xf32>
    %104 = math.tanh %103 : vector<8x32xf32>
    %cst_59 = arith.constant 1.000000e+00 : f32
    %105 = vector.broadcast %cst_59 : f32 to vector<8x32xf32>
    %106 = arith.subf %105, %98 : vector<8x32xf32>
    %107 = arith.mulf %106, %104 : vector<8x32xf32>
    %108 = arith.mulf %98, %75 : vector<8x32xf32>
    %109 = arith.addf %107, %108 : vector<8x32xf32>
    %110 = vector.broadcast %c1_i32 : i32 to vector<8x1xi32>
    %111 = arith.cmpi slt, %110, %35 : vector<8x1xi32>
    %112 = vector.shape_cast %111 : vector<8x1xi1> to vector<8x1xi1>
    %113 = vector.broadcast %112 : vector<8x1xi1> to vector<8x32xi1>
    %114 = arith.select %113, %109, %75 : vector<8x32xi1>, vector<8x32xf32>
    %c2_i32 = arith.constant 2 : i32
    %c8_i32_60 = arith.constant 8 : i32
    %115 = arith.muli %c2_i32, %c8_i32_60 : i32
    %116 = tpu.assume_multiple %115, 8 : i32
    %117 = arith.index_cast %116 : i32 to index
    %c0_61 = arith.constant 0 : index
    %118 = vector.load %arg9[%117, %c0_61] : memref<64x32xf32, #tpu.memory_space<vmem>>, vector<8x32xf32>
    %119 = arith.index_cast %116 : i32 to index
    %c0_62 = arith.constant 0 : index
    %120 = vector.load %arg10[%119, %c0_62] : memref<64x32xf32, #tpu.memory_space<vmem>>, vector<8x32xf32>
    %121 = arith.index_cast %116 : i32 to index
    %c0_63 = arith.constant 0 : index
    %122 = vector.load %arg11[%121, %c0_63] : memref<64x32xf32, #tpu.memory_space<vmem>>, vector<8x32xf32>
    %123 = arith.truncf %114 : vector<8x32xf32> to vector<8x32xbf16>
    %cst_64 = arith.constant dense<0.000000e+00> : vector<8x32xf32>
    %124 = tpu.matmul %123, %27, %cst_64 {dimension_numbers = #tpu.dot_dimension_numbers<[1], [0], [0], [1], [0, 0, 1, 1], [], []>} : vector<8x32xbf16>, vector<32x32xbf16>, vector<8x32xf32> -> vector<8x32xf32>
    %125 = arith.addf %118, %124 : vector<8x32xf32>
    %126 = arith.negf %125 : vector<8x32xf32>
    %127 = math.exp %126 : vector<8x32xf32>
    %cst_65 = arith.constant 1.000000e+00 : f32
    %128 = vector.broadcast %cst_65 : f32 to vector<8x32xf32>
    %129 = arith.addf %128, %127 : vector<8x32xf32>
    %130 = arith.divf %128, %129 : vector<8x32xf32>
    %cst_66 = arith.constant dense<0.000000e+00> : vector<8x32xf32>
    %131 = tpu.matmul %123, %29, %cst_66 {dimension_numbers = #tpu.dot_dimension_numbers<[1], [0], [0], [1], [0, 0, 1, 1], [], []>} : vector<8x32xbf16>, vector<32x32xbf16>, vector<8x32xf32> -> vector<8x32xf32>
    %132 = arith.addf %120, %131 : vector<8x32xf32>
    %133 = arith.negf %132 : vector<8x32xf32>
    %134 = math.exp %133 : vector<8x32xf32>
    %cst_67 = arith.constant 1.000000e+00 : f32
    %135 = vector.broadcast %cst_67 : f32 to vector<8x32xf32>
    %136 = arith.addf %135, %134 : vector<8x32xf32>
    %137 = arith.divf %135, %136 : vector<8x32xf32>
    %cst_68 = arith.constant dense<0.000000e+00> : vector<8x32xf32>
    %138 = tpu.matmul %123, %31, %cst_68 {dimension_numbers = #tpu.dot_dimension_numbers<[1], [0], [0], [1], [0, 0, 1, 1], [], []>} : vector<8x32xbf16>, vector<32x32xbf16>, vector<8x32xf32> -> vector<8x32xf32>
    %139 = vector.broadcast %33 : vector<1x32xf32> to vector<8x32xf32>
    %140 = arith.addf %138, %139 : vector<8x32xf32>
    %141 = arith.mulf %130, %140 : vector<8x32xf32>
    %142 = arith.addf %122, %141 : vector<8x32xf32>
    %143 = math.tanh %142 : vector<8x32xf32>
    %cst_69 = arith.constant 1.000000e+00 : f32
    %144 = vector.broadcast %cst_69 : f32 to vector<8x32xf32>
    %145 = arith.subf %144, %137 : vector<8x32xf32>
    %146 = arith.mulf %145, %143 : vector<8x32xf32>
    %147 = arith.mulf %137, %114 : vector<8x32xf32>
    %148 = arith.addf %146, %147 : vector<8x32xf32>
    %149 = vector.broadcast %c2_i32 : i32 to vector<8x1xi32>
    %150 = arith.cmpi slt, %149, %35 : vector<8x1xi32>
    %151 = vector.shape_cast %150 : vector<8x1xi1> to vector<8x1xi1>
    %152 = vector.broadcast %151 : vector<8x1xi1> to vector<8x32xi1>
    %153 = arith.select %152, %148, %114 : vector<8x32xi1>, vector<8x32xf32>
    %c3_i32 = arith.constant 3 : i32
    %c8_i32_70 = arith.constant 8 : i32
    %154 = arith.muli %c3_i32, %c8_i32_70 : i32
    %155 = tpu.assume_multiple %154, 8 : i32
    %156 = arith.index_cast %155 : i32 to index
    %c0_71 = arith.constant 0 : index
    %157 = vector.load %arg9[%156, %c0_71] : memref<64x32xf32, #tpu.memory_space<vmem>>, vector<8x32xf32>
    %158 = arith.index_cast %155 : i32 to index
    %c0_72 = arith.constant 0 : index
    %159 = vector.load %arg10[%158, %c0_72] : memref<64x32xf32, #tpu.memory_space<vmem>>, vector<8x32xf32>
    %160 = arith.index_cast %155 : i32 to index
    %c0_73 = arith.constant 0 : index
    %161 = vector.load %arg11[%160, %c0_73] : memref<64x32xf32, #tpu.memory_space<vmem>>, vector<8x32xf32>
    %162 = arith.truncf %153 : vector<8x32xf32> to vector<8x32xbf16>
    %cst_74 = arith.constant dense<0.000000e+00> : vector<8x32xf32>
    %163 = tpu.matmul %162, %27, %cst_74 {dimension_numbers = #tpu.dot_dimension_numbers<[1], [0], [0], [1], [0, 0, 1, 1], [], []>} : vector<8x32xbf16>, vector<32x32xbf16>, vector<8x32xf32> -> vector<8x32xf32>
    %164 = arith.addf %157, %163 : vector<8x32xf32>
    %165 = arith.negf %164 : vector<8x32xf32>
    %166 = math.exp %165 : vector<8x32xf32>
    %cst_75 = arith.constant 1.000000e+00 : f32
    %167 = vector.broadcast %cst_75 : f32 to vector<8x32xf32>
    %168 = arith.addf %167, %166 : vector<8x32xf32>
    %169 = arith.divf %167, %168 : vector<8x32xf32>
    %cst_76 = arith.constant dense<0.000000e+00> : vector<8x32xf32>
    %170 = tpu.matmul %162, %29, %cst_76 {dimension_numbers = #tpu.dot_dimension_numbers<[1], [0], [0], [1], [0, 0, 1, 1], [], []>} : vector<8x32xbf16>, vector<32x32xbf16>, vector<8x32xf32> -> vector<8x32xf32>
    %171 = arith.addf %159, %170 : vector<8x32xf32>
    %172 = arith.negf %171 : vector<8x32xf32>
    %173 = math.exp %172 : vector<8x32xf32>
    %cst_77 = arith.constant 1.000000e+00 : f32
    %174 = vector.broadcast %cst_77 : f32 to vector<8x32xf32>
    %175 = arith.addf %174, %173 : vector<8x32xf32>
    %176 = arith.divf %174, %175 : vector<8x32xf32>
    %cst_78 = arith.constant dense<0.000000e+00> : vector<8x32xf32>
    %177 = tpu.matmul %162, %31, %cst_78 {dimension_numbers = #tpu.dot_dimension_numbers<[1], [0], [0], [1], [0, 0, 1, 1], [], []>} : vector<8x32xbf16>, vector<32x32xbf16>, vector<8x32xf32> -> vector<8x32xf32>
    %178 = vector.broadcast %33 : vector<1x32xf32> to vector<8x32xf32>
    %179 = arith.addf %177, %178 : vector<8x32xf32>
    %180 = arith.mulf %169, %179 : vector<8x32xf32>
    %181 = arith.addf %161, %180 : vector<8x32xf32>
    %182 = math.tanh %181 : vector<8x32xf32>
    %cst_79 = arith.constant 1.000000e+00 : f32
    %183 = vector.broadcast %cst_79 : f32 to vector<8x32xf32>
    %184 = arith.subf %183, %176 : vector<8x32xf32>
    %185 = arith.mulf %184, %182 : vector<8x32xf32>
    %186 = arith.mulf %176, %153 : vector<8x32xf32>
    %187 = arith.addf %185, %186 : vector<8x32xf32>
    %188 = vector.broadcast %c3_i32 : i32 to vector<8x1xi32>
    %189 = arith.cmpi slt, %188, %35 : vector<8x1xi32>
    %190 = vector.shape_cast %189 : vector<8x1xi1> to vector<8x1xi1>
    %191 = vector.broadcast %190 : vector<8x1xi1> to vector<8x32xi1>
    %192 = arith.select %191, %187, %153 : vector<8x32xi1>, vector<8x32xf32>
    %c4_i32 = arith.constant 4 : i32
    %c8_i32_80 = arith.constant 8 : i32
    %193 = arith.muli %c4_i32, %c8_i32_80 : i32
    %194 = tpu.assume_multiple %193, 8 : i32
    %195 = arith.index_cast %194 : i32 to index
    %c0_81 = arith.constant 0 : index
    %196 = vector.load %arg9[%195, %c0_81] : memref<64x32xf32, #tpu.memory_space<vmem>>, vector<8x32xf32>
    %197 = arith.index_cast %194 : i32 to index
    %c0_82 = arith.constant 0 : index
    %198 = vector.load %arg10[%197, %c0_82] : memref<64x32xf32, #tpu.memory_space<vmem>>, vector<8x32xf32>
    %199 = arith.index_cast %194 : i32 to index
    %c0_83 = arith.constant 0 : index
    %200 = vector.load %arg11[%199, %c0_83] : memref<64x32xf32, #tpu.memory_space<vmem>>, vector<8x32xf32>
    %201 = arith.truncf %192 : vector<8x32xf32> to vector<8x32xbf16>
    %cst_84 = arith.constant dense<0.000000e+00> : vector<8x32xf32>
    %202 = tpu.matmul %201, %27, %cst_84 {dimension_numbers = #tpu.dot_dimension_numbers<[1], [0], [0], [1], [0, 0, 1, 1], [], []>} : vector<8x32xbf16>, vector<32x32xbf16>, vector<8x32xf32> -> vector<8x32xf32>
    %203 = arith.addf %196, %202 : vector<8x32xf32>
    %204 = arith.negf %203 : vector<8x32xf32>
    %205 = math.exp %204 : vector<8x32xf32>
    %cst_85 = arith.constant 1.000000e+00 : f32
    %206 = vector.broadcast %cst_85 : f32 to vector<8x32xf32>
    %207 = arith.addf %206, %205 : vector<8x32xf32>
    %208 = arith.divf %206, %207 : vector<8x32xf32>
    %cst_86 = arith.constant dense<0.000000e+00> : vector<8x32xf32>
    %209 = tpu.matmul %201, %29, %cst_86 {dimension_numbers = #tpu.dot_dimension_numbers<[1], [0], [0], [1], [0, 0, 1, 1], [], []>} : vector<8x32xbf16>, vector<32x32xbf16>, vector<8x32xf32> -> vector<8x32xf32>
    %210 = arith.addf %198, %209 : vector<8x32xf32>
    %211 = arith.negf %210 : vector<8x32xf32>
    %212 = math.exp %211 : vector<8x32xf32>
    %cst_87 = arith.constant 1.000000e+00 : f32
    %213 = vector.broadcast %cst_87 : f32 to vector<8x32xf32>
    %214 = arith.addf %213, %212 : vector<8x32xf32>
    %215 = arith.divf %213, %214 : vector<8x32xf32>
    %cst_88 = arith.constant dense<0.000000e+00> : vector<8x32xf32>
    %216 = tpu.matmul %201, %31, %cst_88 {dimension_numbers = #tpu.dot_dimension_numbers<[1], [0], [0], [1], [0, 0, 1, 1], [], []>} : vector<8x32xbf16>, vector<32x32xbf16>, vector<8x32xf32> -> vector<8x32xf32>
    %217 = vector.broadcast %33 : vector<1x32xf32> to vector<8x32xf32>
    %218 = arith.addf %216, %217 : vector<8x32xf32>
    %219 = arith.mulf %208, %218 : vector<8x32xf32>
    %220 = arith.addf %200, %219 : vector<8x32xf32>
    %221 = math.tanh %220 : vector<8x32xf32>
    %cst_89 = arith.constant 1.000000e+00 : f32
    %222 = vector.broadcast %cst_89 : f32 to vector<8x32xf32>
    %223 = arith.subf %222, %215 : vector<8x32xf32>
    %224 = arith.mulf %223, %221 : vector<8x32xf32>
    %225 = arith.mulf %215, %192 : vector<8x32xf32>
    %226 = arith.addf %224, %225 : vector<8x32xf32>
    %227 = vector.broadcast %c4_i32 : i32 to vector<8x1xi32>
    %228 = arith.cmpi slt, %227, %35 : vector<8x1xi32>
    %229 = vector.shape_cast %228 : vector<8x1xi1> to vector<8x1xi1>
    %230 = vector.broadcast %229 : vector<8x1xi1> to vector<8x32xi1>
    %231 = arith.select %230, %226, %192 : vector<8x32xi1>, vector<8x32xf32>
    %c5_i32 = arith.constant 5 : i32
    %c8_i32_90 = arith.constant 8 : i32
    %232 = arith.muli %c5_i32, %c8_i32_90 : i32
    %233 = tpu.assume_multiple %232, 8 : i32
    %234 = arith.index_cast %233 : i32 to index
    %c0_91 = arith.constant 0 : index
    %235 = vector.load %arg9[%234, %c0_91] : memref<64x32xf32, #tpu.memory_space<vmem>>, vector<8x32xf32>
    %236 = arith.index_cast %233 : i32 to index
    %c0_92 = arith.constant 0 : index
    %237 = vector.load %arg10[%236, %c0_92] : memref<64x32xf32, #tpu.memory_space<vmem>>, vector<8x32xf32>
    %238 = arith.index_cast %233 : i32 to index
    %c0_93 = arith.constant 0 : index
    %239 = vector.load %arg11[%238, %c0_93] : memref<64x32xf32, #tpu.memory_space<vmem>>, vector<8x32xf32>
    %240 = arith.truncf %231 : vector<8x32xf32> to vector<8x32xbf16>
    %cst_94 = arith.constant dense<0.000000e+00> : vector<8x32xf32>
    %241 = tpu.matmul %240, %27, %cst_94 {dimension_numbers = #tpu.dot_dimension_numbers<[1], [0], [0], [1], [0, 0, 1, 1], [], []>} : vector<8x32xbf16>, vector<32x32xbf16>, vector<8x32xf32> -> vector<8x32xf32>
    %242 = arith.addf %235, %241 : vector<8x32xf32>
    %243 = arith.negf %242 : vector<8x32xf32>
    %244 = math.exp %243 : vector<8x32xf32>
    %cst_95 = arith.constant 1.000000e+00 : f32
    %245 = vector.broadcast %cst_95 : f32 to vector<8x32xf32>
    %246 = arith.addf %245, %244 : vector<8x32xf32>
    %247 = arith.divf %245, %246 : vector<8x32xf32>
    %cst_96 = arith.constant dense<0.000000e+00> : vector<8x32xf32>
    %248 = tpu.matmul %240, %29, %cst_96 {dimension_numbers = #tpu.dot_dimension_numbers<[1], [0], [0], [1], [0, 0, 1, 1], [], []>} : vector<8x32xbf16>, vector<32x32xbf16>, vector<8x32xf32> -> vector<8x32xf32>
    %249 = arith.addf %237, %248 : vector<8x32xf32>
    %250 = arith.negf %249 : vector<8x32xf32>
    %251 = math.exp %250 : vector<8x32xf32>
    %cst_97 = arith.constant 1.000000e+00 : f32
    %252 = vector.broadcast %cst_97 : f32 to vector<8x32xf32>
    %253 = arith.addf %252, %251 : vector<8x32xf32>
    %254 = arith.divf %252, %253 : vector<8x32xf32>
    %cst_98 = arith.constant dense<0.000000e+00> : vector<8x32xf32>
    %255 = tpu.matmul %240, %31, %cst_98 {dimension_numbers = #tpu.dot_dimension_numbers<[1], [0], [0], [1], [0, 0, 1, 1], [], []>} : vector<8x32xbf16>, vector<32x32xbf16>, vector<8x32xf32> -> vector<8x32xf32>
    %256 = vector.broadcast %33 : vector<1x32xf32> to vector<8x32xf32>
    %257 = arith.addf %255, %256 : vector<8x32xf32>
    %258 = arith.mulf %247, %257 : vector<8x32xf32>
    %259 = arith.addf %239, %258 : vector<8x32xf32>
    %260 = math.tanh %259 : vector<8x32xf32>
    %cst_99 = arith.constant 1.000000e+00 : f32
    %261 = vector.broadcast %cst_99 : f32 to vector<8x32xf32>
    %262 = arith.subf %261, %254 : vector<8x32xf32>
    %263 = arith.mulf %262, %260 : vector<8x32xf32>
    %264 = arith.mulf %254, %231 : vector<8x32xf32>
    %265 = arith.addf %263, %264 : vector<8x32xf32>
    %266 = vector.broadcast %c5_i32 : i32 to vector<8x1xi32>
    %267 = arith.cmpi slt, %266, %35 : vector<8x1xi32>
    %268 = vector.shape_cast %267 : vector<8x1xi1> to vector<8x1xi1>
    %269 = vector.broadcast %268 : vector<8x1xi1> to vector<8x32xi1>
    %270 = arith.select %269, %265, %231 : vector<8x32xi1>, vector<8x32xf32>
    %c6_i32 = arith.constant 6 : i32
    %c8_i32_100 = arith.constant 8 : i32
    %271 = arith.muli %c6_i32, %c8_i32_100 : i32
    %272 = tpu.assume_multiple %271, 8 : i32
    %273 = arith.index_cast %272 : i32 to index
    %c0_101 = arith.constant 0 : index
    %274 = vector.load %arg9[%273, %c0_101] : memref<64x32xf32, #tpu.memory_space<vmem>>, vector<8x32xf32>
    %275 = arith.index_cast %272 : i32 to index
    %c0_102 = arith.constant 0 : index
    %276 = vector.load %arg10[%275, %c0_102] : memref<64x32xf32, #tpu.memory_space<vmem>>, vector<8x32xf32>
    %277 = arith.index_cast %272 : i32 to index
    %c0_103 = arith.constant 0 : index
    %278 = vector.load %arg11[%277, %c0_103] : memref<64x32xf32, #tpu.memory_space<vmem>>, vector<8x32xf32>
    %279 = arith.truncf %270 : vector<8x32xf32> to vector<8x32xbf16>
    %cst_104 = arith.constant dense<0.000000e+00> : vector<8x32xf32>
    %280 = tpu.matmul %279, %27, %cst_104 {dimension_numbers = #tpu.dot_dimension_numbers<[1], [0], [0], [1], [0, 0, 1, 1], [], []>} : vector<8x32xbf16>, vector<32x32xbf16>, vector<8x32xf32> -> vector<8x32xf32>
    %281 = arith.addf %274, %280 : vector<8x32xf32>
    %282 = arith.negf %281 : vector<8x32xf32>
    %283 = math.exp %282 : vector<8x32xf32>
    %cst_105 = arith.constant 1.000000e+00 : f32
    %284 = vector.broadcast %cst_105 : f32 to vector<8x32xf32>
    %285 = arith.addf %284, %283 : vector<8x32xf32>
    %286 = arith.divf %284, %285 : vector<8x32xf32>
    %cst_106 = arith.constant dense<0.000000e+00> : vector<8x32xf32>
    %287 = tpu.matmul %279, %29, %cst_106 {dimension_numbers = #tpu.dot_dimension_numbers<[1], [0], [0], [1], [0, 0, 1, 1], [], []>} : vector<8x32xbf16>, vector<32x32xbf16>, vector<8x32xf32> -> vector<8x32xf32>
    %288 = arith.addf %276, %287 : vector<8x32xf32>
    %289 = arith.negf %288 : vector<8x32xf32>
    %290 = math.exp %289 : vector<8x32xf32>
    %cst_107 = arith.constant 1.000000e+00 : f32
    %291 = vector.broadcast %cst_107 : f32 to vector<8x32xf32>
    %292 = arith.addf %291, %290 : vector<8x32xf32>
    %293 = arith.divf %291, %292 : vector<8x32xf32>
    %cst_108 = arith.constant dense<0.000000e+00> : vector<8x32xf32>
    %294 = tpu.matmul %279, %31, %cst_108 {dimension_numbers = #tpu.dot_dimension_numbers<[1], [0], [0], [1], [0, 0, 1, 1], [], []>} : vector<8x32xbf16>, vector<32x32xbf16>, vector<8x32xf32> -> vector<8x32xf32>
    %295 = vector.broadcast %33 : vector<1x32xf32> to vector<8x32xf32>
    %296 = arith.addf %294, %295 : vector<8x32xf32>
    %297 = arith.mulf %286, %296 : vector<8x32xf32>
    %298 = arith.addf %278, %297 : vector<8x32xf32>
    %299 = math.tanh %298 : vector<8x32xf32>
    %cst_109 = arith.constant 1.000000e+00 : f32
    %300 = vector.broadcast %cst_109 : f32 to vector<8x32xf32>
    %301 = arith.subf %300, %293 : vector<8x32xf32>
    %302 = arith.mulf %301, %299 : vector<8x32xf32>
    %303 = arith.mulf %293, %270 : vector<8x32xf32>
    %304 = arith.addf %302, %303 : vector<8x32xf32>
    %305 = vector.broadcast %c6_i32 : i32 to vector<8x1xi32>
    %306 = arith.cmpi slt, %305, %35 : vector<8x1xi32>
    %307 = vector.shape_cast %306 : vector<8x1xi1> to vector<8x1xi1>
    %308 = vector.broadcast %307 : vector<8x1xi1> to vector<8x32xi1>
    %309 = arith.select %308, %304, %270 : vector<8x32xi1>, vector<8x32xf32>
    %c7_i32 = arith.constant 7 : i32
    %c8_i32_110 = arith.constant 8 : i32
    %310 = arith.muli %c7_i32, %c8_i32_110 : i32
    %311 = tpu.assume_multiple %310, 8 : i32
    %312 = arith.index_cast %311 : i32 to index
    %c0_111 = arith.constant 0 : index
    %313 = vector.load %arg9[%312, %c0_111] : memref<64x32xf32, #tpu.memory_space<vmem>>, vector<8x32xf32>
    %314 = arith.index_cast %311 : i32 to index
    %c0_112 = arith.constant 0 : index
    %315 = vector.load %arg10[%314, %c0_112] : memref<64x32xf32, #tpu.memory_space<vmem>>, vector<8x32xf32>
    %316 = arith.index_cast %311 : i32 to index
    %c0_113 = arith.constant 0 : index
    %317 = vector.load %arg11[%316, %c0_113] : memref<64x32xf32, #tpu.memory_space<vmem>>, vector<8x32xf32>
    %318 = arith.truncf %309 : vector<8x32xf32> to vector<8x32xbf16>
    %cst_114 = arith.constant dense<0.000000e+00> : vector<8x32xf32>
    %319 = tpu.matmul %318, %27, %cst_114 {dimension_numbers = #tpu.dot_dimension_numbers<[1], [0], [0], [1], [0, 0, 1, 1], [], []>} : vector<8x32xbf16>, vector<32x32xbf16>, vector<8x32xf32> -> vector<8x32xf32>
    %320 = arith.addf %313, %319 : vector<8x32xf32>
    %321 = arith.negf %320 : vector<8x32xf32>
    %322 = math.exp %321 : vector<8x32xf32>
    %cst_115 = arith.constant 1.000000e+00 : f32
    %323 = vector.broadcast %cst_115 : f32 to vector<8x32xf32>
    %324 = arith.addf %323, %322 : vector<8x32xf32>
    %325 = arith.divf %323, %324 : vector<8x32xf32>
    %cst_116 = arith.constant dense<0.000000e+00> : vector<8x32xf32>
    %326 = tpu.matmul %318, %29, %cst_116 {dimension_numbers = #tpu.dot_dimension_numbers<[1], [0], [0], [1], [0, 0, 1, 1], [], []>} : vector<8x32xbf16>, vector<32x32xbf16>, vector<8x32xf32> -> vector<8x32xf32>
    %327 = arith.addf %315, %326 : vector<8x32xf32>
    %328 = arith.negf %327 : vector<8x32xf32>
    %329 = math.exp %328 : vector<8x32xf32>
    %cst_117 = arith.constant 1.000000e+00 : f32
    %330 = vector.broadcast %cst_117 : f32 to vector<8x32xf32>
    %331 = arith.addf %330, %329 : vector<8x32xf32>
    %332 = arith.divf %330, %331 : vector<8x32xf32>
    %cst_118 = arith.constant dense<0.000000e+00> : vector<8x32xf32>
    %333 = tpu.matmul %318, %31, %cst_118 {dimension_numbers = #tpu.dot_dimension_numbers<[1], [0], [0], [1], [0, 0, 1, 1], [], []>} : vector<8x32xbf16>, vector<32x32xbf16>, vector<8x32xf32> -> vector<8x32xf32>
    %334 = vector.broadcast %33 : vector<1x32xf32> to vector<8x32xf32>
    %335 = arith.addf %333, %334 : vector<8x32xf32>
    %336 = arith.mulf %325, %335 : vector<8x32xf32>
    %337 = arith.addf %317, %336 : vector<8x32xf32>
    %338 = math.tanh %337 : vector<8x32xf32>
    %cst_119 = arith.constant 1.000000e+00 : f32
    %339 = vector.broadcast %cst_119 : f32 to vector<8x32xf32>
    %340 = arith.subf %339, %332 : vector<8x32xf32>
    %341 = arith.mulf %340, %338 : vector<8x32xf32>
    %342 = arith.mulf %332, %309 : vector<8x32xf32>
    %343 = arith.addf %341, %342 : vector<8x32xf32>
    %344 = vector.broadcast %c7_i32 : i32 to vector<8x1xi32>
    %345 = arith.cmpi slt, %344, %35 : vector<8x1xi32>
    %346 = vector.shape_cast %345 : vector<8x1xi1> to vector<8x1xi1>
    %347 = vector.broadcast %346 : vector<8x1xi1> to vector<8x32xi1>
    %348 = arith.select %347, %343, %309 : vector<8x32xi1>, vector<8x32xf32>
    %c8_i32_120 = arith.constant 8 : i32
    %349 = arith.truncf %348 : vector<8x32xf32> to vector<8x32xbf16>
    %c0_121 = arith.constant 0 : index
    %c0_122 = arith.constant 0 : index
    %350 = vector.load %arg6[%c0_121, %c0_122] : memref<32x128xbf16, #tpu.memory_space<vmem>>, vector<32x128xbf16>
    %cst_123 = arith.constant dense<0.000000e+00> : vector<8x128xf32>
    %351 = tpu.matmul %349, %350, %cst_123 {dimension_numbers = #tpu.dot_dimension_numbers<[1], [0], [0], [1], [0, 0, 1, 1], [], []>} : vector<8x32xbf16>, vector<32x128xbf16>, vector<8x128xf32> -> vector<8x128xf32>
    %c0_124 = arith.constant 0 : index
    %c0_125 = arith.constant 0 : index
    %352 = vector.load %arg7[%c0_124, %c0_125] : memref<1x128xf32, #tpu.memory_space<vmem>>, vector<1x128xf32>
    %353 = vector.broadcast %352 : vector<1x128xf32> to vector<8x128xf32>
    %354 = arith.addf %351, %353 : vector<8x128xf32>
    %c0_126 = arith.constant 0 : index
    %c0_127 = arith.constant 0 : index
    %c0_128 = arith.constant 0 : index
    %355 = vector.load %arg8[%c0_126, %c0_127, %c0_128] : memref<1x8x128xf32, #tpu.memory_space<vmem>>, vector<1x8x128xf32>
    %356 = vector.shape_cast %355 : vector<1x8x128xf32> to vector<8x128xf32>
    %357 = vector.shape_cast %354 : vector<8x128xf32> to vector<1x8x128xf32>
    tpu.vector_store %arg8[%c0_126, %c0_127, %c0_128], %357 {strides = array<i32>} : memref<1x8x128xf32, #tpu.memory_space<vmem>>, vector<1x8x128xf32>,
    return
  }
  func.func @transform_0(%arg0: i32) -> (i32, i32, i32) {
    %c0_i32 = arith.constant 0 : i32
    %c0_i32_0 = arith.constant 0 : i32
    %c0_i32_1 = arith.constant 0 : i32
    return %arg0, %c0_i32, %c0_i32_0 : i32, i32, i32
  }
  func.func @transform_1(%arg0: i32) -> (i32, i32, i32) {
    %c0_i32 = arith.constant 0 : i32
    %c0_i32_0 = arith.constant 0 : i32
    %c0_i32_1 = arith.constant 0 : i32
    return %arg0, %c0_i32, %c0_i32_0 : i32, i32, i32
  }
  func.func @transform_2(%arg0: i32) -> (i32, i32, i32) {
    %c0_i32 = arith.constant 0 : i32
    %c0_i32_0 = arith.constant 0 : i32
    %c0_i32_1 = arith.constant 0 : i32
    %c0_i32_2 = arith.constant 0 : i32
    return %c0_i32, %c0_i32_0, %c0_i32_1 : i32, i32, i32
  }
  func.func @transform_3(%arg0: i32) -> (i32, i32, i32) {
    %c0_i32 = arith.constant 0 : i32
    %c0_i32_0 = arith.constant 0 : i32
    %c0_i32_1 = arith.constant 0 : i32
    %c0_i32_2 = arith.constant 0 : i32
    return %c0_i32, %c0_i32_0, %c0_i32_1 : i32, i32, i32
  }
  func.func @transform_4(%arg0: i32) -> (i32, i32, i32) {
    %c0_i32 = arith.constant 0 : i32
    %c0_i32_0 = arith.constant 0 : i32
    %c0_i32_1 = arith.constant 0 : i32
    %c0_i32_2 = arith.constant 0 : i32
    return %c0_i32, %c0_i32_0, %c0_i32_1 : i32, i32, i32
  }
  func.func @transform_5(%arg0: i32) -> (i32, i32) {
    %c0_i32 = arith.constant 0 : i32
    %c0_i32_0 = arith.constant 0 : i32
    %c0_i32_1 = arith.constant 0 : i32
    return %c0_i32, %c0_i32_0 : i32, i32
  }
  func.func @transform_6(%arg0: i32) -> (i32, i32) {
    %c0_i32 = arith.constant 0 : i32
    %c0_i32_0 = arith.constant 0 : i32
    %c0_i32_1 = arith.constant 0 : i32
    return %c0_i32, %c0_i32_0 : i32, i32
  }
  func.func @transform_7(%arg0: i32) -> (i32, i32, i32) {
    %c0_i32 = arith.constant 0 : i32
    %c0_i32_0 = arith.constant 0 : i32
    %c0_i32_1 = arith.constant 0 : i32
    return %arg0, %c0_i32, %c0_i32_0 : i32, i32, i32
  }
}

</mosaic_0001>

<bundles_post_ra>
// kernel: tpu_custom_call.1
= control target key start
LH: loop header
LB: loop body
LE: loop exit
PB: predicated region body
PF: predicated region fallthrough
CT: control target
= control target key end

     0   :  { %12 = vsyncpa [#allocation6], 0  ;;  %s2733_s0 = inlined_call_operand.vmem [shape: s32[1,8,1], index: 0, kind: input, shape index: {}]   ;;  %s2734_s1 = inlined_call_operand.vmem [shape: bf16[1,64,32], index: 1, kind: input, shape index: {}]   ;;  %s2735_s2 = inlined_call_operand.vmem [shape: bf16[3,32,32], index: 2, kind: input, shape index: {}]   ;;  %s2736_s3 = inlined_call_operand.hbm [shape: bf16[3,32,32], index: 3, kind: input, shape index: {}]   ;;  %s2737_s4 = inlined_call_operand.vmem [shape: f32[4,1,32], index: 4, kind: input, shape index: {}]   ;;  %s2738_s5 = inlined_call_operand.vmem [shape: bf16[32,128], index: 5, kind: input, shape index: {}]   ;;  %s2739_s6 = inlined_call_operand.vmem [shape: f32[1,128], index: 6, kind: input, shape index: {}]   ;;  %s2740_s7 = inlined_call_operand.hbm [shape: f32[1,8,128], index: 7, kind: output, shape index: {}]  }
   0x1   :  { %13 = vsyncpa [#allocation7], 0  ;;  %s2349_s24 = smov [#allocation5]   ;;  %s2301_s28 = scalar_lea.hbm %s2736_s3, 768 }
   0x2   :  { %s25_s25 = sshll.u32 %s2349_s24, 4  ;;  %p2302_p0 = scmp.ne.s32.totalorder %s2736_s3, %s2301_s28  ;;  %s26_s25 = int_to_ptr.vmem [resolvable:$true] %s25_s25 }
   0x3   :  { %p2305_p1 = scmp.lt.u32.totalorder %s2301_s28, %s2736_s3 }
   0x5   :  { %p2307_p2 = pnand %p2305_p1, %p2302_p0 }
   0x7   :  { %2310 = shalt.err (!%p2307_p2)
}
   0x8   :  { %s2311_s10 = scalar_lea.vmem %s26_s25, 768  ;;  %p2316_p4 = scmp.lt.s32.totalorder %s26_s25, %s26_s25 }
   0x9   :  { %p2312_p3 = scmp.ne.s32.totalorder %s26_s25, %s2311_s10  ;;  %p2317_p5 = scmp.lt.s32.totalorder %s2311_s10, %s2311_s10 }
   0xb   :  { %p2318_p6 = por %p2317_p5, %p2316_p4 }
   0xd   :  { %p2319_p7 = pnand %p2318_p6, %p2312_p3 }
   0xf   :  { %2322 = shalt.err (!%p2319_p7)
}
  0x10   :  { %s2350_s11 = smov 64   ;;  %s2351_s12 = smov 4  }
  0x11   :  { %31 = dma.hbm_to_vmem [thread:$0]  %s2736_s3, 768, %s26_s25, [#allocation6], %s2350_s11, %s2350_s11, %s2351_s12  }
  0x12   :  { %2345 = dma.done.wait [#allocation6], 768  }
  0x13   :  { %2346 = vsyncadd [#allocation6], 4294966528  ;;  %v2352_v0 = vmov 0   ;;  %v2199_v1 = vld [vmem:[%s2735_s2 + $0x10] sm:$0xff]   ;;  %v2200_v2 = vld [vmem:[%s2735_s2] sm:$0xff]   ;;  %vm93_vm0 = vcmask 261120  }
  0x14   :  { %2197 = vset.pattern.permute.xlu0 %v2352_v0  ;;  %2198 = vset.pattern.permute.xlu1 %v2352_v0  ;;  %v2201_v3 = vld [vmem:[%s2735_s2 + $0x18] sm:$0xff]   ;;  %v2202_v4 = vld [vmem:[%s2735_s2 + $0x8] sm:$0xff]   ;;  %v2203_v5 = vld [vmem:[%s2734_s1] sm:$0xff]   ;;  %v2353_v8 = vmov 0.0   ;;  %vm2354_vm2 = vmmov 0   ;;  %s2355_s21 = smov [#allocation8]  }
  0x15   :  { %1966 = vmatprep.subr.bf16.mxu1 %v2199_v1  ;;  %1954 = vmatprep.subr.bf16.mxu0 %v2200_v2  ;;  %v2204_v6 = vld [vmem:[%s2734_s1 + $0x8] sm:$0xff]   ;;  %v2206_v9 = vld [vmem:[%s2734_s1 + $0x10] sm:$0xff]   ;;  %v2209_v10 = vld [vmem:[%s2735_s2 + $0x20] sm:$0xff]   ;;  %s1768_s22 = sshll.u32 %s2355_s21, 4  ;;  %s1769_s22 = int_to_ptr.vmem [resolvable:$true] %s1768_s22 }
  0x16   :  { %1967 = vmatpush3.bf16.msra.mxu1 %v2199_v1  ;;  %1955 = vmatpush3.bf16.msra.mxu0 %v2200_v2  ;;  %v2430_v7 = vld [vmem:[#allocation5] sm:$0xff]   ;;  %v2442_v11 = vld [vmem:[#allocation5 + $0x8] sm:$0xff]   ;;  %v2207_v13 = vld [vmem:[%s2734_s1 + $0x18] sm:$0xff]   ;;  %s2323_s23 = scalar_lea.vmem %s1769_s22, 128  ;;  %p2328_p9 = scmp.lt.s32.totalorder %s1769_s22, %s1769_s22 }
  0x17   :  { %1968 = vmatprep.subr.bf16.mxu1 %v2201_v3  ;;  %1956 = vmatprep.subr.bf16.mxu0 %v2202_v4  ;;  %v2211_v12 = vld [vmem:[%s2735_s2 + $0x28] sm:$0xff]   ;;  %v2458_v14 = vld [vmem:[%s2733_s0] sm:$0xff]  ;;  %v2470_v17 = vld [vmem:[#allocation5 + $0x10] sm:$0xff]   ;;  %p2324_p8 = scmp.ne.s32.totalorder %s1769_s22, %s2323_s23  ;;  %p2329_p10 = scmp.lt.s32.totalorder %s2323_s23, %s2323_s23 }
  0x18   :  { %1970 = vmatprep.mubr.msk.bf16.mxu1 %vm93_vm0, %v2203_v5  ;;  %1958 = vmatprep.mubr.msk.bf16.mxu0 %vm93_vm0, %v2203_v5  ;;  %vm581_vm1 = vcmp.gt.s32.totalorder %v2458_v14, 0  ;;  %vm739_vm3 = vcmp.gt.s32.totalorder %v2458_v14, 1  ;;  %vm1213_vm4 = vcmp.gt.s32.totalorder %v2458_v14, 4  ;;  %v2473_v18 = vld [vmem:[#allocation5 + $0x20] sm:$0xff]   ;;  %v2477_v19 = vld [vmem:[#allocation5 + $0x18] sm:$0xff]   ;;  %vm1529_vm5 = vcmp.gt.s32.totalorder %v2458_v14, 6 }
  0x19   :  { %v582_v15 = vsel %vm581_vm1, 1, %v2352_v0  ;;  %v740_v16 = vsel %vm739_vm3, 1, %v2352_v0  ;;  %v1214_v20 = vsel %vm1213_vm4, 1, %v2352_v0  ;;  %v2487_v21 = vld [vmem:[#allocation5 + $0x28] sm:$0xff]   ;;  %v1530_v22 = vsel %vm1529_vm5, 1, %v2352_v0  ;;  %p2330_p11 = por %p2329_p10, %p2328_p9 }
  0x1a   :  { %1969 = vmatpush3.bf16.msra.mxu1 %v2201_v3  ;;  %1957 = vmatpush3.bf16.msra.mxu0 %v2202_v4  ;;  %v1793_v23 = vld [vmem:[%s2737_s4 + $0x1] ss:$0 sm:$0xff]  ;;  %v1777_v24 = vld [vmem:[%s2737_s4] ss:$0 sm:$0xff]  ;;  %v1805_v59 = vld [vmem:[%s2737_s4 + $0x2] ss:$0 sm:$0xff] }
  0x1b   :  { %1990 = vmatprep.subr.bf16.mxu1 %v2353_v8  ;;  %1978 = vmatprep.subr.bf16.mxu0 %v2209_v10  ;;  %vm897_vm7 = vcmp.gt.s32.totalorder %v2458_v14, 2  ;;  %vm1055_vm8 = vcmp.gt.s32.totalorder %v2458_v14, 3  ;;  %vm1371_vm9 = vcmp.gt.s32.totalorder %v2458_v14, 5  ;;  %vm1687_vm10 = vcmp.gt.s32.totalorder %v2458_v14, 7  ;;  %p2331_p12 = pnand %p2330_p11, %p2324_p8 }
  0x1c   :  { %584 = vperm.xlu0 %2197, %v582_v15  }
  0x1d   :  { %1971 = vmatmul.mubr.msk.bf16.vlgmr.msra.gmra.mrb[0].mxu1 %vm93_vm0, %v2204_v6  ;;  %1959 = vmatmul.mubr.msk.bf16.vlgmr.msra.gmra.mrb[0].mxu0 %vm93_vm0, %v2204_v6 }
  0x1e   :  { %1991 = vmatpush3.bf16.msra.mxu1 %v2430_v7  ;;  %1974 = vmatprep.mubr.msk.bf16.mxu1 %vm93_vm0, %v2206_v9 }
  0x1f   :  { %1992 = vmatprep.subr.bf16.mxu1 %v2353_v8  ;;  %1962 = vmatprep.mubr.msk.bf16.mxu0 %vm93_vm0, %v2206_v9 }
  0x20   :  { %1979 = vmatpush3.bf16.msra.mxu0 %v2209_v10  ;;  %742 = vperm.xlu0 %2197, %v740_v16  }
  0x21   :  { %1980 = vmatprep.subr.bf16.mxu0 %v2211_v12 }
  0x22   :  { %1993 = vmatpush3.bf16.msra.mxu1 %v2442_v11 }
  0x23   :  { %1998 = vmatprep.subr.bf16.mxu1 %v2353_v8 }
  0x24   :  { %1981 = vmatpush3.bf16.msra.mxu0 %v2211_v12  ;;  %1216 = vperm.xlu0 %2197, %v1214_v20  }
  0x25   :  { %1975 = vmatmul.mubr.msk.bf16.gmra.mrb[4].mxu1 %vm93_vm0, %v2207_v13  ;;  %1963 = vmatmul.mubr.msk.bf16.gmra.mrb[4].mxu0 %vm93_vm0, %v2207_v13 }
  0x26   :  { %1994 = vmatprep.mubr.msk.bf16.mxu1 %vm2354_vm2, %v2353_v8  ;;  %1982 = vmatprep.mubr.msk.bf16.mxu0 %vm93_vm0, %v2203_v5 }
  0x27   :  { %2006 = vmatprep.subr.bf16.mxu0 %v2353_v8 }
  0x28   :  { %1532 = vperm.xlu0 %2197, %v1530_v22  }
  0x2d   :  { %1995 = vmatmul.mubr.bf16.vlgmr.msra.gmra.mrb[8].mxu1 %v2352_v0  ;;  %1983 = vmatmul.mubr.msk.bf16.vlgmr.msra.gmra.mrb[8].mxu0 %vm93_vm0, %v2204_v6 }
  0x2e   :  { %1999 = vmatpush3.bf16.msra.mxu1 %v2470_v17  ;;  %2002 = vmatprep.mubr.msk.bf16.mxu1 %vm2354_vm2, %v2353_v8 }
  0x2f   :  { %2000 = vmatprep.subr.bf16.mxu1 %v2353_v8  ;;  %2007 = vmatpush3.bf16.msra.mxu0 %v2473_v18 }
  0x30   :  { %1986 = vmatprep.mubr.msk.bf16.mxu0 %vm93_vm0, %v2206_v9  ;;  %2008 = vmatprep.subr.bf16.mxu0 %v2353_v8 }
  0x32   :  { %2001 = vmatpush3.bf16.msra.mxu1 %v2477_v19 }
  0x33   :  { %2014 = vmatprep.subr.bf16.mxu1 %v2353_v8  ;;  %2009 = vmatpush3.bf16.msra.mxu0 %v2487_v21 }
  0x34   :  { %2022 = vmatprep.subr.bf16.mxu0 %v2353_v8 }
  0x35   :  { %2003 = vmatmul.mubr.bf16.vlgmr.msra.gmra.mrb[12].mxu1 %v2352_v0  ;;  %1987 = vmatmul.mubr.msk.bf16.gmra.mrb[12].mxu0 %vm93_vm0, %v2207_v13 }
  0x36   :  { %2015 = vmatpush3.bf16.msra.mxu1 %v2430_v7  ;;  %2010 = vmatprep.mubr.msk.bf16.mxu0 %vm2354_vm2, %v2353_v8 }
  0x37   :  { %2016 = vmatprep.subr.bf16.mxu1 %v2353_v8  ;;  %2018 = vmatprep.mubr.msk.bf16.mxu1 %vm2354_vm2, %v2353_v8 }
  0x3a   :  { %2017 = vmatpush3.bf16.msra.mxu1 %v2442_v11 }
  0x3b   :  { %2030 = vmatprep.subr.bf16.mxu1 %v2353_v8 }
  0x3d   :  { %2011 = vmatmul.mubr.bf16.vlgmr.msra.gmra.mrb[16].mxu0 %v2352_v0 }
  0x3e   :  { %2023 = vmatpush3.bf16.msra.mxu0 %v2470_v17  ;;  %2026 = vmatprep.mubr.msk.bf16.mxu0 %vm2354_vm2, %v2353_v8 }
  0x3f   :  { %2024 = vmatprep.subr.bf16.mxu0 %v2353_v8 }
  0x42   :  { %2025 = vmatpush3.bf16.msra.mxu0 %v2477_v19 }
  0x43   :  { %2038 = vmatprep.subr.bf16.mxu0 %v2353_v8 }
  0xf0   :  { %v1972_v25 = vpop.f32.mrb[0].mxu1  ;;  %v1960_v28 = vpop.f32.mrb[0].mxu0 }
  0xf1   :  { %v247_v26 = vadd.f32 %v1972_v25, %v1793_v23  ;;  %v238_v27 = vpop.f32.mrb[1].mxu1  ;;  %v149_v31 = vadd.f32 %v1960_v28, %v1777_v24  ;;  %v140_v32 = vpop.f32.mrb[1].mxu0 }
  0xf2   :  { %v239_v29 = vadd.f32 %v1793_v23, %v238_v27  ;;  %v1973_v30 = vpop.f32.mrb[2].mxu1  ;;  %v141_v35 = vadd.f32 %v1777_v24, %v140_v32  ;;  %v1961_v36 = vpop.f32.mrb[2].mxu0 }
  0xf3   :  { %271 = vst.msk [vmem:[#allocation3 + $0x10] sm:$0xff] %vm93_vm0, %v247_v26  ;;  %v250_v33 = vadd.f32 %v1973_v30, %v1793_v23  ;;  %v241_v34 = vpop.f32.mrb[3].mxu1  ;;  %173 = vst.msk [vmem:[#allocation2 + $0x10] sm:$0xff] %vm93_vm0, %v149_v31  ;;  %v152_v38 = vadd.f32 %v1961_v36, %v1777_v24  ;;  %v143_v39 = vpop.f32.mrb[3].mxu0 }
  0xf4   :  { %269 = vst.msk [vmem:[#allocation3] sm:$0xff] %vm93_vm0, %v239_v29  ;;  %v242_v37 = vadd.f32 %v1793_v23, %v241_v34  ;;  %171 = vst.msk [vmem:[#allocation2] sm:$0xff] %vm93_vm0, %v141_v35  ;;  %v144_v40 = vadd.f32 %v1777_v24, %v143_v39  ;;  %v2548_v39 = vld [vmem:[%s2737_s4 + $0x3] ss:$0 sm:$0xff] }
  0xf5   :  { %272 = vst.msk [vmem:[#allocation3 + $0x18] sm:$0xff] %vm93_vm0, %v250_v33  ;;  %174 = vst.msk [vmem:[#allocation2 + $0x18] sm:$0xff] %vm93_vm0, %v152_v38 }
  0xf6   :  { %270 = vst.msk [vmem:[#allocation3 + $0x8] sm:$0xff] %vm93_vm0, %v242_v37  ;;  %172 = vst.msk [vmem:[#allocation2 + $0x8] sm:$0xff] %vm93_vm0, %v144_v40 }
  0xf8   :  { %v1976_v41 = vpop.f32.mrb[4].mxu1  ;;  %v1964_v44 = vpop.f32.mrb[4].mxu0 }
  0xf9   :  { %v263_v42 = vadd.f32 %v1976_v41, %v1793_v23  ;;  %v254_v43 = vpop.f32.mrb[5].mxu1  ;;  %v165_v47 = vadd.f32 %v1964_v44, %v1777_v24  ;;  %v156_v48 = vpop.f32.mrb[5].mxu0 }
  0xfa   :  { %v255_v45 = vadd.f32 %v1793_v23, %v254_v43  ;;  %v1977_v46 = vpop.f32.mrb[6].mxu1  ;;  %v157_v51 = vadd.f32 %v1777_v24, %v156_v48  ;;  %v1965_v52 = vpop.f32.mrb[6].mxu0 }
  0xfb   :  { %275 = vst.msk [vmem:[#allocation3 + $0x30] sm:$0xff] %vm93_vm0, %v263_v42  ;;  %v266_v49 = vadd.f32 %v1977_v46, %v1793_v23  ;;  %v257_v50 = vpop.f32.mrb[7].mxu1  ;;  %177 = vst.msk [vmem:[#allocation2 + $0x30] sm:$0xff] %vm93_vm0, %v165_v47  ;;  %v168_v54 = vadd.f32 %v1965_v52, %v1777_v24  ;;  %v159_v55 = vpop.f32.mrb[7].mxu0  ;;  %v392_v57 = vld [vmem:[#allocation2] sm:$0xff] }
  0xfc   :  { %273 = vst.msk [vmem:[#allocation3 + $0x20] sm:$0xff] %vm93_vm0, %v255_v45  ;;  %v258_v53 = vadd.f32 %v1793_v23, %v257_v50  ;;  %175 = vst.msk [vmem:[#allocation2 + $0x20] sm:$0xff] %vm93_vm0, %v157_v51  ;;  %v160_v56 = vadd.f32 %v1777_v24, %v159_v55  ;;  %v393_v13 = vld [vmem:[#allocation3] sm:$0xff]  ;;  %v585_v50 = vpop.permute.xlu0 %584 }
  0xfd   :  { %276 = vst.msk [vmem:[#allocation3 + $0x38] sm:$0xff] %vm93_vm0, %v266_v49  ;;  %178 = vst.msk [vmem:[#allocation2 + $0x38] sm:$0xff] %vm93_vm0, %v168_v54  ;;  %vm586_vm6 = vcmp.eq.s32.totalorder %v585_v50, 1 }
  0xfe   :  { %274 = vst.msk [vmem:[#allocation3 + $0x28] sm:$0xff] %vm93_vm0, %v258_v53  ;;  %176 = vst.msk [vmem:[#allocation2 + $0x28] sm:$0xff] %vm93_vm0, %v160_v56  ;;  %v898_v56 = vsel %vm897_vm7, 1, %v2352_v0 }
  0xff   :  { %900 = vperm.xlu1 %2198, %v898_v56  }
 0x100   :  { %v444_v58 = vpop.f32.mrb[8].mxu1  ;;  %v1984_v63 = vpop.f32.mrb[8].mxu0 }
 0x101   :  { %v450_v60 = vadd.f32 %v444_v58, %v392_v57  ;;  %v1996_v61 = vpop.f32.mrb[9].mxu1  ;;  %v345_v3 = vadd.f32 %v1984_v63, %v1805_v59  ;;  %v336_v4 = vpop.f32.mrb[9].mxu0  ;;  %v1056_v57 = vsel %vm1055_vm8, 1, %v2352_v0  ;;  %v1372_v58 = vsel %vm1371_vm9, 1, %v2352_v0 }
 0x102   :  { %v447_v62 = vpop.f32.mrb[10].mxu1  ;;  %v337_v5 = vadd.f32 %v1805_v59, %v336_v4  ;;  %v1985_v6 = vpop.f32.mrb[10].mxu0 }
 0x103   :  { %v1815_v1 = vmul.f32 -1.442695, %v450_v60  ;;  %v1997_v2 = vpop.f32.mrb[11].mxu1  ;;  %369 = vst.msk [vmem:[#allocation4 + $0x10] sm:$0xff] %vm93_vm0, %v345_v3  ;;  %v348_v9 = vadd.f32 %v1985_v6, %v1805_v59  ;;  %v339_v10 = vpop.f32.mrb[11].mxu0  ;;  %1058 = vperm.xlu1 %2198, %v1056_v57   ;;  %v589_v60 = vld [vmem:[#allocation2 + $0x8] sm:$0xff] }
 0x104   :  { %367 = vst.msk [vmem:[#allocation4] sm:$0xff] %vm93_vm0, %v337_v5  ;;  %v340_v12 = vadd.f32 %v1805_v59, %v339_v10  ;;  %v591_v6 = vld [vmem:[#allocation3 + $0x8] sm:$0xff] }
 0x105   :  { %2217 = vpow2.f32 %v1815_v1  ;;  %370 = vst.msk [vmem:[#allocation4 + $0x18] sm:$0xff] %vm93_vm0, %v348_v9 }
 0x106   :  { %368 = vst.msk [vmem:[#allocation4 + $0x8] sm:$0xff] %vm93_vm0, %v340_v12 }
 0x107   :  { %1374 = vperm.xlu1 %2198, %v1372_v58  }
 0x108   :  { %v503_v15 = vpop.f32.mrb[12].mxu1  ;;  %v1988_v23 = vpop.f32.mrb[12].mxu0 }
 0x109   :  { %v509_v16 = vadd.f32 %v503_v15, %v393_v13  ;;  %v2004_v20 = vpop.f32.mrb[13].mxu1  ;;  %v361_v26 = vadd.f32 %v1988_v23, %v1805_v59  ;;  %v352_v27 = vpop.f32.mrb[13].mxu0 }
 0x10a   :  { %v506_v22 = vpop.f32.mrb[14].mxu1  ;;  %v353_v28 = vadd.f32 %v1805_v59, %v352_v27  ;;  %v1989_v29 = vpop.f32.mrb[14].mxu0 }
 0x10b   :  { %v1818_v24 = vmul.f32 -1.442695, %v509_v16  ;;  %v2005_v25 = vpop.f32.mrb[15].mxu1  ;;  %373 = vst.msk [vmem:[#allocation4 + $0x30] sm:$0xff] %vm93_vm0, %v361_v26  ;;  %v364_v30 = vadd.f32 %v1989_v29, %v1805_v59  ;;  %v355_v31 = vpop.f32.mrb[15].mxu0  ;;  %v394_v45 = vld [vmem:[#allocation4] sm:$0xff] }
 0x10c   :  { %371 = vst.msk [vmem:[#allocation4 + $0x20] sm:$0xff] %vm93_vm0, %v353_v28  ;;  %v356_v32 = vadd.f32 %v1805_v59, %v355_v31  ;;  %v1688_v59 = vsel %vm1687_vm10, 1, %v2352_v0 }
 0x10d   :  { %2219 = vpow2.f32 %v1818_v24  ;;  %374 = vst.msk [vmem:[#allocation4 + $0x38] sm:$0xff] %vm93_vm0, %v364_v30  ;;  %1690 = vperm.xlu1 %2198, %v1688_v59   ;;  %v593_v28 = vld [vmem:[#allocation4 + $0x8] sm:$0xff] }
 0x10e   :  { %372 = vst.msk [vmem:[#allocation4 + $0x28] sm:$0xff] %vm93_vm0, %v356_v32 }
 0x10f   :  { %v2218_v33 = vpop.eup %2217 }
 0x110   :  { %v454_v34 = vadd.f32 1.0, %v2218_v33  ;;  %v568_v35 = vpop.f32.mrb[16].mxu0 }
 0x111   :  { %v2012_v36 = vpop.f32.mrb[17].mxu0  ;;  %v569_v42 = vadd.f32 %v2548_v39, %v568_v35  ;;  %v743_v35 = vpop.permute.xlu0 %742 }
 0x112   :  { %2221 = vrcp.f32 %v454_v34  ;;  %v571_v37 = vpop.f32.mrb[18].mxu0  ;;  %vm744_vm11 = vcmp.eq.s32.totalorder %v743_v35, 1 }
 0x113   :  { %v2013_v38 = vpop.f32.mrb[19].mxu0 }
 0x117   :  { %v2220_v40 = vpop.eup %2219 }
 0x118   :  { %v513_v41 = vadd.f32 1.0, %v2220_v40  ;;  %v747_v40 = vld [vmem:[#allocation2 + $0x10] sm:$0xff] }
 0x11a   :  { %2223 = vrcp.f32 %v513_v41 }
 0x11c   :  { %v2222_v43 = vpop.eup %2221 }
 0x11d   :  { %v574_v44 = vmul.f32 %v2222_v43, %v569_v42 }
 0x11f   :  { %v575_v46 = vadd.f32 %v574_v44, %v394_v45 }
 0x121   :  { %2225 = vtanh.f32 %v575_v46 }
 0x124   :  { %v2224_v47 = vpop.eup %2223 }
 0x125   :  { %v577_v48 = vsub.f32 1.0, %v2224_v47  ;;  %v579_v52 = vmul.f32 0.0, %v2224_v47 }
 0x12b   :  { %v2226_v49 = vpop.eup %2225 }
 0x12c   :  { %v578_v51 = vmul.f32 %v2226_v49, %v577_v48  ;;  %v749_v49 = vld [vmem:[#allocation3 + $0x10] sm:$0xff] }
 0x12e   :  { %v580_v53 = vadd.f32 %v579_v52, %v578_v51 }
 0x130   :  { %v2551_v54 = vsel %vm586_vm6, %v580_v53, 0.0 }
 0x131   :  { %v594_v55 = vpack.c.bf16 %v2551_v54, %v2551_v54 }
 0x133   :  { %2019 = vmatmul.mubr.msk.bf16.vlgmr.msra.gmra.mrb[16].mxu1 %vm93_vm0, %v594_v55  ;;  %2027 = vmatmul.mubr.msk.bf16.vlgmr.msra.gmra.mrb[20].mxu0 %vm93_vm0, %v594_v55 }
 0x134   :  { %2031 = vmatpush3.bf16.msra.mxu1 %v2473_v18  ;;  %2034 = vmatprep.mubr.msk.bf16.mxu1 %vm2354_vm2, %v2353_v8 }
 0x135   :  { %2032 = vmatprep.subr.bf16.mxu1 %v2353_v8  ;;  %2039 = vmatpush3.bf16.msra.mxu0 %v2430_v7 }
 0x136   :  { %2040 = vmatprep.subr.bf16.mxu0 %v2353_v8  ;;  %2042 = vmatprep.mubr.msk.bf16.mxu0 %vm2354_vm2, %v2353_v8 }
 0x138   :  { %2033 = vmatpush3.bf16.msra.mxu1 %v2487_v21 }
 0x139   :  { %2046 = vmatprep.subr.bf16.mxu1 %v2353_v8  ;;  %2041 = vmatpush3.bf16.msra.mxu0 %v2442_v11 }
 0x13a   :  { %2054 = vmatprep.subr.bf16.mxu0 %v2353_v8 }
 0x13b   :  { %2035 = vmatmul.mubr.msk.bf16.vlgmr.msra.gmra.mrb[20].mxu1 %vm93_vm0, %v594_v55 }
 0x13c   :  { %2047 = vmatpush3.bf16.msra.mxu1 %v2470_v17  ;;  %2050 = vmatprep.mubr.msk.bf16.mxu1 %vm2354_vm2, %v2353_v8 }
 0x13d   :  { %2048 = vmatprep.subr.bf16.mxu1 %v2353_v8 }
 0x140   :  { %2049 = vmatpush3.bf16.msra.mxu1 %v2477_v19 }
 0x141   :  { %2062 = vmatprep.subr.bf16.mxu1 %v2353_v8 }
 0x206   :  { %v632_v61 = vpop.f32.mrb[16].mxu1  ;;  %v679_v62 = vpop.f32.mrb[20].mxu0 }
 0x207   :  { %v638_v63 = vadd.f32 %v632_v61, %v589_v60  ;;  %v2020_v1 = vpop.f32.mrb[17].mxu1  ;;  %v2028_v2 = vpop.f32.mrb[21].mxu0  ;;  %v685_v12 = vadd.f32 %v679_v62, %v591_v6 }
 0x208   :  { %v635_v3 = vpop.f32.mrb[18].mxu1  ;;  %v682_v4 = vpop.f32.mrb[22].mxu0  ;;  %v751_v2 = vld [vmem:[#allocation4 + $0x10] sm:$0xff] }
 0x209   :  { %v1823_v5 = vmul.f32 -1.442695, %v638_v63  ;;  %v2021_v9 = vpop.f32.mrb[19].mxu1  ;;  %v2029_v10 = vpop.f32.mrb[23].mxu0  ;;  %v1825_v13 = vmul.f32 -1.442695, %v685_v12 }
 0x20a   :  { %v901_v9 = vpop.permute.xlu1 %900 }
 0x20b   :  { %2227 = vpow2.f32 %v1823_v5  ;;  %vm902_vm12 = vcmp.eq.s32.totalorder %v901_v9, 1 }
 0x20c   :  { %2229 = vpow2.f32 %v1825_v13 }
 0x20e   :  { %v726_v14 = vpop.f32.mrb[20].mxu1 }
 0x20f   :  { %v2036_v15 = vpop.f32.mrb[21].mxu1  ;;  %v727_v25 = vadd.f32 %v2548_v39, %v726_v14 }
 0x210   :  { %v729_v16 = vpop.f32.mrb[22].mxu1 }
 0x211   :  { %v2037_v0 = vpop.f32.mrb[23].mxu1  ;;  %v905_v16 = vld [vmem:[#allocation2 + $0x18] sm:$0xff] }
 0x215   :  { %v2228_v20 = vpop.eup %2227 }
 0x216   :  { %v642_v22 = vadd.f32 1.0, %v2228_v20  ;;  %v2230_v23 = vpop.eup %2229 }
 0x217   :  { %v689_v24 = vadd.f32 1.0, %v2230_v23 }
 0x218   :  { %2231 = vrcp.f32 %v642_v22 }
 0x219   :  { %2233 = vrcp.f32 %v689_v24 }
 0x222   :  { %v2232_v26 = vpop.eup %2231 }
 0x223   :  { %v732_v27 = vmul.f32 %v2232_v26, %v727_v25  ;;  %v2234_v30 = vpop.eup %2233 }
 0x224   :  { %v735_v31 = vsub.f32 1.0, %v2234_v30  ;;  %v737_v33 = vmul.f32 %v2234_v30, %v2551_v54 }
 0x225   :  { %v733_v29 = vadd.f32 %v732_v27, %v593_v28  ;;  %v907_v28 = vld [vmem:[#allocation3 + $0x18] sm:$0xff] }
 0x227   :  { %2235 = vtanh.f32 %v733_v29 }
 0x231   :  { %v2236_v32 = vpop.eup %2235 }
 0x232   :  { %v736_v34 = vmul.f32 %v2236_v32, %v735_v31 }
 0x234   :  { %v738_v36 = vadd.f32 %v737_v33, %v736_v34 }
 0x236   :  { %v745_v37 = vsel %vm744_vm11, %v738_v36, %v2551_v54 }
 0x237   :  { %v752_v38 = vpack.c.bf16 %v745_v37, %v745_v37 }
 0x239   :  { %2043 = vmatmul.mubr.msk.bf16.vlgmr.msra.gmra.mrb[24].mxu0 %vm93_vm0, %v752_v38  ;;  %2051 = vmatmul.mubr.msk.bf16.vlgmr.msra.gmra.mrb[24].mxu1 %vm93_vm0, %v752_v38 }
 0x23a   :  { %2055 = vmatpush3.bf16.msra.mxu0 %v2473_v18  ;;  %2058 = vmatprep.mubr.msk.bf16.mxu0 %vm2354_vm2, %v2353_v8 }
 0x23b   :  { %2056 = vmatprep.subr.bf16.mxu0 %v2353_v8  ;;  %2063 = vmatpush3.bf16.msra.mxu1 %v2430_v7 }
 0x23c   :  { %2064 = vmatprep.subr.bf16.mxu1 %v2353_v8  ;;  %2066 = vmatprep.mubr.msk.bf16.mxu1 %vm2354_vm2, %v2353_v8 }
 0x23e   :  { %2057 = vmatpush3.bf16.msra.mxu0 %v2487_v21 }
 0x23f   :  { %2070 = vmatprep.subr.bf16.mxu0 %v2353_v8  ;;  %2065 = vmatpush3.bf16.msra.mxu1 %v2442_v11 }
 0x240   :  { %2078 = vmatprep.subr.bf16.mxu1 %v2353_v8 }
 0x241   :  { %2059 = vmatmul.mubr.msk.bf16.vlgmr.msra.gmra.mrb[28].mxu0 %vm93_vm0, %v752_v38 }
 0x242   :  { %2071 = vmatpush3.bf16.msra.mxu0 %v2470_v17  ;;  %2074 = vmatprep.mubr.msk.bf16.mxu0 %vm2354_vm2, %v2353_v8 }
 0x243   :  { %2072 = vmatprep.subr.bf16.mxu0 %v2353_v8 }
 0x246   :  { %2073 = vmatpush3.bf16.msra.mxu0 %v2477_v19 }
 0x247   :  { %2086 = vmatprep.subr.bf16.mxu0 %v2353_v8 }
 0x30c   :  { %v790_v41 = vpop.f32.mrb[24].mxu0  ;;  %v837_v42 = vpop.f32.mrb[24].mxu1 }
 0x30d   :  { %v796_v43 = vadd.f32 %v790_v41, %v747_v40  ;;  %v2044_v44 = vpop.f32.mrb[25].mxu0  ;;  %v2052_v45 = vpop.f32.mrb[25].mxu1  ;;  %v843_v52 = vadd.f32 %v837_v42, %v749_v49 }
 0x30e   :  { %v793_v46 = vpop.f32.mrb[26].mxu0  ;;  %v840_v47 = vpop.f32.mrb[26].mxu1  ;;  %v909_v45 = vld [vmem:[#allocation4 + $0x18] sm:$0xff] }
 0x30f   :  { %v1828_v48 = vmul.f32 -1.442695, %v796_v43  ;;  %v2045_v50 = vpop.f32.mrb[27].mxu0  ;;  %v2053_v51 = vpop.f32.mrb[27].mxu1  ;;  %v1830_v53 = vmul.f32 -1.442695, %v843_v52 }
 0x310   :  { %v1059_v52 = vpop.permute.xlu1 %1058 }
 0x311   :  { %2237 = vpow2.f32 %v1828_v48  ;;  %vm1060_vm13 = vcmp.eq.s32.totalorder %v1059_v52, 1 }
 0x312   :  { %2239 = vpow2.f32 %v1830_v53 }
 0x314   :  { %v884_v54 = vpop.f32.mrb[28].mxu0 }
 0x315   :  { %v2060_v55 = vpop.f32.mrb[29].mxu0  ;;  %v885_v62 = vadd.f32 %v2548_v39, %v884_v54 }
 0x316   :  { %v887_v56 = vpop.f32.mrb[30].mxu0 }
 0x317   :  { %v2061_v57 = vpop.f32.mrb[31].mxu0  ;;  %v1063_v56 = vld [vmem:[#allocation2 + $0x20] sm:$0xff] }
 0x31b   :  { %v2238_v58 = vpop.eup %2237 }
 0x31c   :  { %v800_v59 = vadd.f32 1.0, %v2238_v58  ;;  %v2240_v60 = vpop.eup %2239 }
 0x31d   :  { %v847_v61 = vadd.f32 1.0, %v2240_v60 }
 0x31e   :  { %2241 = vrcp.f32 %v800_v59 }
 0x31f   :  { %2243 = vrcp.f32 %v847_v61 }
 0x328   :  { %v2242_v63 = vpop.eup %2241 }
 0x329   :  { %v890_v1 = vmul.f32 %v2242_v63, %v885_v62  ;;  %v2244_v4 = vpop.eup %2243 }
 0x32a   :  { %v893_v5 = vsub.f32 1.0, %v2244_v4  ;;  %v895_v12 = vmul.f32 %v2244_v4, %v745_v37 }
 0x32b   :  { %v891_v3 = vadd.f32 %v890_v1, %v751_v2  ;;  %v1065_v2 = vld [vmem:[#allocation3 + $0x20] sm:$0xff] }
 0x32d   :  { %2245 = vtanh.f32 %v891_v3 }
 0x337   :  { %v2246_v6 = vpop.eup %2245 }
 0x338   :  { %v894_v10 = vmul.f32 %v2246_v6, %v893_v5 }
 0x33a   :  { %v896_v13 = vadd.f32 %v895_v12, %v894_v10 }
 0x33c   :  { %v903_v14 = vsel %vm902_vm12, %v896_v13, %v745_v37 }
 0x33d   :  { %v910_v15 = vpack.c.bf16 %v903_v14, %v903_v14 }
 0x33f   :  { %2067 = vmatmul.mubr.msk.bf16.vlgmr.msra.gmra.mrb[28].mxu1 %vm93_vm0, %v910_v15  ;;  %2075 = vmatmul.mubr.msk.bf16.vlgmr.msra.gmra.mrb[32].mxu0 %vm93_vm0, %v910_v15 }
 0x340   :  { %2079 = vmatpush3.bf16.msra.mxu1 %v2473_v18  ;;  %2082 = vmatprep.mubr.msk.bf16.mxu1 %vm2354_vm2, %v2353_v8 }
 0x341   :  { %2080 = vmatprep.subr.bf16.mxu1 %v2353_v8  ;;  %2087 = vmatpush3.bf16.msra.mxu0 %v2430_v7 }
 0x342   :  { %2088 = vmatprep.subr.bf16.mxu0 %v2353_v8  ;;  %2090 = vmatprep.mubr.msk.bf16.mxu0 %vm2354_vm2, %v2353_v8 }
 0x344   :  { %2081 = vmatpush3.bf16.msra.mxu1 %v2487_v21 }
 0x345   :  { %2094 = vmatprep.subr.bf16.mxu1 %v2353_v8  ;;  %2089 = vmatpush3.bf16.msra.mxu0 %v2442_v11 }
 0x346   :  { %2102 = vmatprep.subr.bf16.mxu0 %v2353_v8 }
 0x347   :  { %2083 = vmatmul.mubr.msk.bf16.vlgmr.msra.gmra.mrb[32].mxu1 %vm93_vm0, %v910_v15 }
 0x348   :  { %2095 = vmatpush3.bf16.msra.mxu1 %v2470_v17  ;;  %2098 = vmatprep.mubr.msk.bf16.mxu1 %vm2354_vm2, %v2353_v8 }
 0x349   :  { %2096 = vmatprep.subr.bf16.mxu1 %v2353_v8 }
 0x34c   :  { %2097 = vmatpush3.bf16.msra.mxu1 %v2477_v19 }
 0x34d   :  { %2110 = vmatprep.subr.bf16.mxu1 %v2353_v8 }
 0x412   :  { %v948_v0 = vpop.f32.mrb[28].mxu1  ;;  %v995_v20 = vpop.f32.mrb[32].mxu0 }
 0x413   :  { %v954_v22 = vadd.f32 %v948_v0, %v905_v16  ;;  %v2068_v23 = vpop.f32.mrb[29].mxu1  ;;  %v2076_v24 = vpop.f32.mrb[33].mxu0  ;;  %v1001_v31 = vadd.f32 %v995_v20, %v907_v28 }
 0x414   :  { %v951_v25 = vpop.f32.mrb[30].mxu1  ;;  %v998_v26 = vpop.f32.mrb[34].mxu0  ;;  %v1067_v24 = vld [vmem:[#allocation4 + $0x20] sm:$0xff] }
 0x415   :  { %v1833_v27 = vmul.f32 -1.442695, %v954_v22  ;;  %v2069_v29 = vpop.f32.mrb[31].mxu1  ;;  %v2077_v30 = vpop.f32.mrb[35].mxu0  ;;  %v1835_v32 = vmul.f32 -1.442695, %v1001_v31 }
 0x416   :  { %v1217_v31 = vpop.permute.xlu0 %1216 }
 0x417   :  { %2247 = vpow2.f32 %v1833_v27  ;;  %vm1218_vm14 = vcmp.eq.s32.totalorder %v1217_v31, 1 }
 0x418   :  { %2249 = vpow2.f32 %v1835_v32 }
 0x41a   :  { %v1042_v33 = vpop.f32.mrb[32].mxu1 }
 0x41b   :  { %v2084_v34 = vpop.f32.mrb[33].mxu1  ;;  %v1043_v42 = vadd.f32 %v2548_v39, %v1042_v33 }
 0x41c   :  { %v1045_v35 = vpop.f32.mrb[34].mxu1 }
 0x41d   :  { %v2085_v36 = vpop.f32.mrb[35].mxu1 }
 0x421   :  { %v2248_v37 = vpop.eup %2247 }
 0x422   :  { %v958_v38 = vadd.f32 1.0, %v2248_v37  ;;  %v2250_v40 = vpop.eup %2249 }
 0x423   :  { %v1005_v41 = vadd.f32 1.0, %v2250_v40 }
 0x424   :  { %2251 = vrcp.f32 %v958_v38 }
 0x425   :  { %2253 = vrcp.f32 %v1005_v41 }
 0x42e   :  { %v2252_v43 = vpop.eup %2251 }
 0x42f   :  { %v1048_v44 = vmul.f32 %v2252_v43, %v1043_v42  ;;  %v2254_v47 = vpop.eup %2253  ;;  %v1223_v43 = vld [vmem:[#allocation3 + $0x28] sm:$0xff] }
 0x430   :  { %v1051_v48 = vsub.f32 1.0, %v2254_v47  ;;  %v1053_v50 = vmul.f32 %v2254_v47, %v903_v14 }
 0x431   :  { %v1049_v46 = vadd.f32 %v1048_v44, %v909_v45 }
 0x433   :  { %2255 = vtanh.f32 %v1049_v46 }
 0x43d   :  { %v2256_v49 = vpop.eup %2255 }
 0x43e   :  { %v1052_v51 = vmul.f32 %v2256_v49, %v1051_v48 }
 0x440   :  { %v1054_v53 = vadd.f32 %v1053_v50, %v1052_v51 }
 0x442   :  { %v1061_v54 = vsel %vm1060_vm13, %v1054_v53, %v903_v14 }
 0x443   :  { %v1068_v55 = vpack.c.bf16 %v1061_v54, %v1061_v54 }
 0x445   :  { %2091 = vmatmul.mubr.msk.bf16.vlgmr.msra.gmra.mrb[36].mxu0 %vm93_vm0, %v1068_v55  ;;  %2099 = vmatmul.mubr.msk.bf16.vlgmr.msra.gmra.mrb[36].mxu1 %vm93_vm0, %v1068_v55 }
 0x446   :  { %2103 = vmatpush3.bf16.msra.mxu0 %v2473_v18  ;;  %2106 = vmatprep.mubr.msk.bf16.mxu0 %vm2354_vm2, %v2353_v8 }
 0x447   :  { %2104 = vmatprep.subr.bf16.mxu0 %v2353_v8  ;;  %2111 = vmatpush3.bf16.msra.mxu1 %v2430_v7 }
 0x448   :  { %2112 = vmatprep.subr.bf16.mxu1 %v2353_v8  ;;  %2114 = vmatprep.mubr.msk.bf16.mxu1 %vm2354_vm2, %v2353_v8 }
 0x44a   :  { %2105 = vmatpush3.bf16.msra.mxu0 %v2487_v21 }
 0x44b   :  { %2118 = vmatprep.subr.bf16.mxu0 %v2353_v8  ;;  %2113 = vmatpush3.bf16.msra.mxu1 %v2442_v11 }
 0x44c   :  { %2126 = vmatprep.subr.bf16.mxu1 %v2353_v8 }
 0x44d   :  { %2107 = vmatmul.mubr.msk.bf16.vlgmr.msra.gmra.mrb[40].mxu0 %vm93_vm0, %v1068_v55 }
 0x44e   :  { %2119 = vmatpush3.bf16.msra.mxu0 %v2470_v17  ;;  %2122 = vmatprep.mubr.msk.bf16.mxu0 %vm2354_vm2, %v2353_v8 }
 0x44f   :  { %2120 = vmatprep.subr.bf16.mxu0 %v2353_v8 }
 0x452   :  { %2121 = vmatpush3.bf16.msra.mxu0 %v2477_v19 }
 0x453   :  { %2134 = vmatprep.subr.bf16.mxu0 %v2353_v8 }
 0x518   :  { %v1106_v57 = vpop.f32.mrb[36].mxu0  ;;  %v1153_v58 = vpop.f32.mrb[36].mxu1 }
 0x519   :  { %v1112_v59 = vadd.f32 %v1106_v57, %v1063_v56  ;;  %v2092_v60 = vpop.f32.mrb[37].mxu0  ;;  %v2100_v61 = vpop.f32.mrb[37].mxu1  ;;  %v1159_v5 = vadd.f32 %v1153_v58, %v1065_v2 }
 0x51a   :  { %v1109_v62 = vpop.f32.mrb[38].mxu0  ;;  %v1156_v63 = vpop.f32.mrb[38].mxu1 }
 0x51b   :  { %v1838_v1 = vmul.f32 -1.442695, %v1112_v59  ;;  %v2093_v3 = vpop.f32.mrb[39].mxu0  ;;  %v2101_v4 = vpop.f32.mrb[39].mxu1  ;;  %v1840_v6 = vmul.f32 -1.442695, %v1159_v5 }
 0x51c   :  { %v1225_v59 = vld [vmem:[#allocation4 + $0x28] sm:$0xff]  ;;  %v1375_v3 = vpop.permute.xlu1 %1374 }
 0x51d   :  { %2257 = vpow2.f32 %v1838_v1  ;;  %vm1376_vm15 = vcmp.eq.s32.totalorder %v1375_v3, 1 }
 0x51e   :  { %2259 = vpow2.f32 %v1840_v6 }
 0x520   :  { %v1200_v9 = vpop.f32.mrb[40].mxu0 }
 0x521   :  { %v2108_v10 = vpop.f32.mrb[41].mxu0  ;;  %v1201_v20 = vadd.f32 %v2548_v39, %v1200_v9  ;;  %v2297_v9 = vld [vmem:[#allocation5] sm:$0xff]  }
 0x522   :  { %v1203_v12 = vpop.f32.mrb[42].mxu0  ;;  %v2298_v10 = vld [vmem:[#allocation5 + $0x8] sm:$0xff]  }
 0x523   :  { %v2109_v13 = vpop.f32.mrb[43].mxu0 }
 0x527   :  { %v2258_v14 = vpop.eup %2257 }
 0x528   :  { %v1116_v15 = vadd.f32 1.0, %v2258_v14  ;;  %v2260_v16 = vpop.eup %2259 }
 0x529   :  { %v1163_v0 = vadd.f32 1.0, %v2260_v16 }
 0x52a   :  { %2261 = vrcp.f32 %v1116_v15 }
 0x52b   :  { %2263 = vrcp.f32 %v1163_v0 }
 0x534   :  { %v2262_v22 = vpop.eup %2261 }
 0x535   :  { %v1206_v23 = vmul.f32 %v2262_v22, %v1201_v20  ;;  %v2264_v26 = vpop.eup %2263  ;;  %v1381_v22 = vld [vmem:[#allocation3 + $0x30] sm:$0xff] }
 0x536   :  { %v1209_v27 = vsub.f32 1.0, %v2264_v26  ;;  %v1211_v29 = vmul.f32 %v2264_v26, %v1061_v54 }
 0x537   :  { %v1207_v25 = vadd.f32 %v1206_v23, %v1067_v24 }
 0x539   :  { %2265 = vtanh.f32 %v1207_v25 }
 0x543   :  { %v2266_v28 = vpop.eup %2265 }
 0x544   :  { %v1210_v30 = vmul.f32 %v2266_v28, %v1209_v27 }
 0x546   :  { %v1212_v32 = vadd.f32 %v1211_v29, %v1210_v30 }
 0x548   :  { %v1219_v33 = vsel %vm1218_vm14, %v1212_v32, %v1061_v54 }
 0x549   :  { %v1226_v34 = vpack.c.bf16 %v1219_v33, %v1219_v33 }
 0x54b   :  { %2115 = vmatmul.mubr.msk.bf16.vlgmr.msra.gmra.mrb[40].mxu1 %vm93_vm0, %v1226_v34  ;;  %2123 = vmatmul.mubr.msk.bf16.vlgmr.msra.gmra.mrb[44].mxu0 %vm93_vm0, %v1226_v34 }
 0x54c   :  { %2127 = vmatpush3.bf16.msra.mxu1 %v2473_v18  ;;  %2130 = vmatprep.mubr.msk.bf16.mxu1 %vm2354_vm2, %v2353_v8 }
 0x54d   :  { %2128 = vmatprep.subr.bf16.mxu1 %v2353_v8  ;;  %2135 = vmatpush3.bf16.msra.mxu0 %v2430_v7  ;;  %v1221_v7 = vld [vmem:[#allocation2 + $0x28] sm:$0xff] }
 0x54e   :  { %2136 = vmatprep.subr.bf16.mxu0 %v2353_v8  ;;  %2138 = vmatprep.mubr.msk.bf16.mxu0 %vm2354_vm2, %v2353_v8 }
 0x550   :  { %2129 = vmatpush3.bf16.msra.mxu1 %v2487_v21 }
 0x551   :  { %2142 = vmatprep.subr.bf16.mxu1 %v2353_v8  ;;  %2137 = vmatpush3.bf16.msra.mxu0 %v2442_v11 }
 0x552   :  { %2150 = vmatprep.subr.bf16.mxu0 %v2353_v8 }
 0x553   :  { %2131 = vmatmul.mubr.msk.bf16.vlgmr.msra.gmra.mrb[44].mxu1 %vm93_vm0, %v1226_v34 }
 0x554   :  { %2143 = vmatpush3.bf16.msra.mxu1 %v2470_v17  ;;  %2146 = vmatprep.mubr.msk.bf16.mxu1 %vm2354_vm2, %v2353_v8 }
 0x555   :  { %2144 = vmatprep.subr.bf16.mxu1 %v2353_v8 }
 0x558   :  { %2145 = vmatpush3.bf16.msra.mxu1 %v2477_v19 }
 0x559   :  { %2158 = vmatprep.subr.bf16.mxu1 %v2353_v8 }
 0x61e   :  { %v1264_v35 = vpop.f32.mrb[40].mxu1  ;;  %v1311_v36 = vpop.f32.mrb[44].mxu0 }
 0x61f   :  { %v1270_v37 = vadd.f32 %v1264_v35, %v1221_v7  ;;  %v2116_v11 = vpop.f32.mrb[41].mxu1  ;;  %v2124_v38 = vpop.f32.mrb[45].mxu0  ;;  %v1317_v46 = vadd.f32 %v1311_v36, %v1223_v43  ;;  %v1383_v35 = vld [vmem:[#allocation4 + $0x30] sm:$0xff] }
 0x620   :  { %v1267_v40 = vpop.f32.mrb[42].mxu1  ;;  %v1314_v41 = vpop.f32.mrb[46].mxu0 }
 0x621   :  { %v1843_v42 = vmul.f32 -1.442695, %v1270_v37  ;;  %v2117_v44 = vpop.f32.mrb[43].mxu1  ;;  %v2125_v45 = vpop.f32.mrb[47].mxu0  ;;  %v1845_v47 = vmul.f32 -1.442695, %v1317_v46 }
 0x622   :  { %v1533_v40 = vpop.permute.xlu0 %1532  ;;  %v2299_v46 = vld [vmem:[#allocation5 + $0x20] sm:$0xff]  }
 0x623   :  { %2267 = vpow2.f32 %v1843_v42  ;;  %vm1534_vm1 = vcmp.eq.s32.totalorder %v1533_v40, 1 }
 0x624   :  { %2269 = vpow2.f32 %v1845_v47  ;;  %v2300_v47 = vld [vmem:[#allocation5 + $0x28] sm:$0xff]  }
 0x626   :  { %v1358_v48 = vpop.f32.mrb[44].mxu1 }
 0x627   :  { %v2132_v49 = vpop.f32.mrb[45].mxu1  ;;  %v1359_v56 = vadd.f32 %v2548_v39, %v1358_v48  ;;  %v2215_v48 = vld [vmem:[%s2738_s5] sm:$0xff]  }
 0x628   :  { %v1361_v50 = vpop.f32.mrb[46].mxu1  ;;  %v2216_v49 = vld [vmem:[%s2738_s5 + $0x8] sm:$0xff]  }
 0x629   :  { %v2133_v51 = vpop.f32.mrb[47].mxu1  ;;  %v1537_v50 = vld [vmem:[#allocation2 + $0x38] sm:$0xff] }
 0x62d   :  { %v2268_v52 = vpop.eup %2267 }
 0x62e   :  { %v1274_v53 = vadd.f32 1.0, %v2268_v52  ;;  %v2270_v54 = vpop.eup %2269 }
 0x62f   :  { %v1321_v55 = vadd.f32 1.0, %v2270_v54 }
 0x630   :  { %2271 = vrcp.f32 %v1274_v53 }
 0x631   :  { %2273 = vrcp.f32 %v1321_v55 }
 0x63a   :  { %v2272_v57 = vpop.eup %2271 }
 0x63b   :  { %v1364_v58 = vmul.f32 %v2272_v57, %v1359_v56  ;;  %v2274_v61 = vpop.eup %2273 }
 0x63c   :  { %v1367_v62 = vsub.f32 1.0, %v2274_v61  ;;  %v1369_v1 = vmul.f32 %v2274_v61, %v1219_v33 }
 0x63d   :  { %v1365_v60 = vadd.f32 %v1364_v58, %v1225_v59  ;;  %v1539_v59 = vld [vmem:[#allocation3 + $0x38] sm:$0xff] }
 0x63f   :  { %2275 = vtanh.f32 %v1365_v60 }
 0x649   :  { %v2276_v63 = vpop.eup %2275 }
 0x64a   :  { %v1368_v2 = vmul.f32 %v2276_v63, %v1367_v62 }
 0x64c   :  { %v1370_v4 = vadd.f32 %v1369_v1, %v1368_v2 }
 0x64e   :  { %v2675_v5 = vsel %vm1376_vm15, %v1370_v4, %v1219_v33 }
 0x64f   :  { %v1384_v6 = vpack.c.bf16 %v2675_v5, %v2675_v5 }
 0x651   :  { %2139 = vmatmul.mubr.msk.bf16.vlgmr.msra.gmra.mrb[48].mxu0 %vm93_vm0, %v1384_v6  ;;  %2147 = vmatmul.mubr.msk.bf16.vlgmr.msra.gmra.mrb[48].mxu1 %vm93_vm0, %v1384_v6 }
 0x652   :  { %2151 = vmatpush3.bf16.msra.mxu0 %v2473_v18  ;;  %2154 = vmatprep.mubr.msk.bf16.mxu0 %vm2354_vm2, %v2353_v8  ;;  %v1379_v18 = vld [vmem:[#allocation2 + $0x30] sm:$0xff] }
 0x653   :  { %2152 = vmatprep.subr.bf16.mxu0 %v2353_v8  ;;  %2159 = vmatpush3.bf16.msra.mxu1 %v2297_v9 }
 0x654   :  { %2160 = vmatprep.subr.bf16.mxu1 %v2353_v8  ;;  %2162 = vmatprep.mubr.msk.bf16.mxu1 %vm2354_vm2, %v2353_v8 }
 0x656   :  { %2153 = vmatpush3.bf16.msra.mxu0 %v2487_v21 }
 0x657   :  { %2166 = vmatprep.subr.bf16.mxu0 %v2353_v8  ;;  %2161 = vmatpush3.bf16.msra.mxu1 %v2298_v10 }
 0x658   :  { %2174 = vmatprep.subr.bf16.mxu1 %v2353_v8 }
 0x659   :  { %2155 = vmatmul.mubr.msk.bf16.vlgmr.msra.gmra.mrb[52].mxu0 %vm93_vm0, %v1384_v6 }
 0x65a   :  { %2167 = vmatpush3.bf16.msra.mxu0 %v2470_v17  ;;  %2170 = vmatprep.mubr.msk.bf16.mxu0 %vm2354_vm2, %v2353_v8 }
 0x65b   :  { %2168 = vmatprep.subr.bf16.mxu0 %v2353_v8 }
 0x65e   :  { %2169 = vmatpush3.bf16.msra.mxu0 %v2477_v19 }
 0x65f   :  { %2182 = vmatprep.subr.bf16.mxu0 %v2353_v8 }
 0x724   :  { %v1422_v21 = vpop.f32.mrb[48].mxu0  ;;  %v1469_v12 = vpop.f32.mrb[48].mxu1 }
 0x725   :  { %v1428_v13 = vadd.f32 %v1422_v21, %v1379_v18  ;;  %v2140_v14 = vpop.f32.mrb[49].mxu0  ;;  %v2148_v15 = vpop.f32.mrb[49].mxu1  ;;  %v1475_v24 = vadd.f32 %v1469_v12, %v1381_v22  ;;  %v1541_v12 = vld [vmem:[#allocation4 + $0x38] sm:$0xff] }
 0x726   :  { %v1425_v16 = vpop.f32.mrb[50].mxu0  ;;  %v1472_v0 = vpop.f32.mrb[50].mxu1 }
 0x727   :  { %v1848_v20 = vmul.f32 -1.442695, %v1428_v13  ;;  %v2141_v17 = vpop.f32.mrb[51].mxu0  ;;  %v2149_v23 = vpop.f32.mrb[51].mxu1  ;;  %v1850_v25 = vmul.f32 -1.442695, %v1475_v24 }
 0x728   :  { %v1691_v0 = vpop.permute.xlu1 %1690 }
 0x729   :  { %2277 = vpow2.f32 %v1848_v20 }
 0x72a   :  { %2279 = vpow2.f32 %v1850_v25 }
 0x72c   :  { %v1516_v26 = vpop.f32.mrb[52].mxu0 }
 0x72d   :  { %v2156_v27 = vpop.f32.mrb[53].mxu0  ;;  %v1517_v33 = vadd.f32 %v2548_v39, %v1516_v26 }
 0x72e   :  { %v1519_v19 = vpop.f32.mrb[54].mxu0 }
 0x72f   :  { %v2157_v28 = vpop.f32.mrb[55].mxu0 }
 0x733   :  { %v2278_v29 = vpop.eup %2277 }
 0x734   :  { %v1432_v30 = vadd.f32 1.0, %v2278_v29  ;;  %v2280_v31 = vpop.eup %2279 }
 0x735   :  { %v1479_v32 = vadd.f32 1.0, %v2280_v31 }
 0x736   :  { %2281 = vrcp.f32 %v1432_v30 }
 0x737   :  { %2283 = vrcp.f32 %v1479_v32 }
 0x740   :  { %v2282_v34 = vpop.eup %2281 }
 0x741   :  { %v1522_v7 = vmul.f32 %v2282_v34, %v1517_v33  ;;  %v2284_v37 = vpop.eup %2283 }
 0x742   :  { %v1525_v11 = vsub.f32 1.0, %v2284_v37  ;;  %v1527_v41 = vmul.f32 %v2284_v37, %v2675_v5 }
 0x743   :  { %v1523_v36 = vadd.f32 %v1522_v7, %v1383_v35 }
 0x745   :  { %2285 = vtanh.f32 %v1523_v36 }
 0x74f   :  { %v2286_v38 = vpop.eup %2285 }
 0x750   :  { %v1526_v42 = vmul.f32 %v2286_v38, %v1525_v11 }
 0x752   :  { %v1528_v43 = vadd.f32 %v1527_v41, %v1526_v42 }
 0x754   :  { %v1535_v44 = vsel %vm1534_vm1, %v1528_v43, %v2675_v5 }
 0x755   :  { %v1542_v45 = vpack.c.bf16 %v1535_v44, %v1535_v44 }
 0x757   :  { %2163 = vmatmul.mubr.msk.bf16.vlgmr.msra.gmra.mrb[52].mxu1 %vm93_vm0, %v1542_v45  ;;  %2171 = vmatmul.mubr.msk.bf16.vlgmr.msra.gmra.mrb[56].mxu0 %vm93_vm0, %v1542_v45 }
 0x758   :  { %2175 = vmatpush3.bf16.msra.mxu1 %v2299_v46  ;;  %2178 = vmatprep.mubr.msk.bf16.mxu1 %vm2354_vm2, %v2353_v8 }
 0x759   :  { %2176 = vmatprep.subr.bf16.mxu1 %v2353_v8  ;;  %2186 = vmatprep.mubr.msk.bf16.mxu0 %vm2354_vm2, %v2353_v8  ;;  %vm1692_vm2 = vcmp.eq.s32.totalorder %v1691_v0, 1 }
 0x75a   :  { %2183 = vmatpush3.bf16.msra.mxu0 %v2215_v48 }
 0x75b   :  { %2184 = vmatprep.subr.bf16.mxu0 %v2353_v8 }
 0x75c   :  { %2177 = vmatpush3.bf16.msra.mxu1 %v2300_v47 }
 0x75e   :  { %2185 = vmatpush3.bf16.msra.mxu0 %v2216_v49 }
 0x75f   :  { %2179 = vmatmul.mubr.msk.bf16.vlgmr.msra.gmra.mrb[56].mxu1 %vm93_vm0, %v1542_v45 }
 0x82a   :  { %v1580_v51 = vpop.f32.mrb[52].mxu1  ;;  %v1627_v52 = vpop.f32.mrb[56].mxu0 }
 0x82b   :  { %v1586_v53 = vadd.f32 %v1580_v51, %v1537_v50  ;;  %v2164_v54 = vpop.f32.mrb[53].mxu1  ;;  %v2172_v55 = vpop.f32.mrb[57].mxu0  ;;  %v1633_v62 = vadd.f32 %v1627_v52, %v1539_v59 }
 0x82c   :  { %v1583_v56 = vpop.f32.mrb[54].mxu1  ;;  %v1630_v57 = vpop.f32.mrb[58].mxu0 }
 0x82d   :  { %v1853_v58 = vmul.f32 -1.442695, %v1586_v53  ;;  %v2165_v60 = vpop.f32.mrb[55].mxu1  ;;  %v2173_v61 = vpop.f32.mrb[59].mxu0  ;;  %v1855_v63 = vmul.f32 -1.442695, %v1633_v62 }
 0x82f   :  { %2287 = vpow2.f32 %v1853_v58 }
 0x830   :  { %2289 = vpow2.f32 %v1855_v63 }
 0x832   :  { %v1674_v1 = vpop.f32.mrb[56].mxu1 }
 0x833   :  { %v2180_v2 = vpop.f32.mrb[57].mxu1  ;;  %v1675_v10 = vadd.f32 %v2548_v39, %v1674_v1  ;;  %v1857_v39 = vld [vmem:[%s2739_s6] ss:$0 sm:$0xff] }
 0x834   :  { %v1677_v3 = vpop.f32.mrb[58].mxu1 }
 0x835   :  { %v2181_v8 = vpop.f32.mrb[59].mxu1 }
 0x839   :  { %v2288_v4 = vpop.eup %2287 }
 0x83a   :  { %v1590_v5 = vadd.f32 1.0, %v2288_v4  ;;  %v2290_v6 = vpop.eup %2289 }
 0x83b   :  { %v1637_v9 = vadd.f32 1.0, %v2290_v6 }
 0x83c   :  { %2291 = vrcp.f32 %v1590_v5 }
 0x83d   :  { %2293 = vrcp.f32 %v1637_v9 }
 0x846   :  { %v2292_v18 = vpop.eup %2291 }
 0x847   :  { %v1680_v21 = vmul.f32 %v2292_v18, %v1675_v10  ;;  %v2294_v14 = vpop.eup %2293 }
 0x848   :  { %v1683_v15 = vsub.f32 1.0, %v2294_v14  ;;  %v1685_v20 = vmul.f32 %v2294_v14, %v1535_v44 }
 0x849   :  { %v1681_v13 = vadd.f32 %v1680_v21, %v1541_v12 }
 0x84b   :  { %2295 = vtanh.f32 %v1681_v13 }
 0x855   :  { %v2296_v16 = vpop.eup %2295 }
 0x856   :  { %v1684_v22 = vmul.f32 %v2296_v16, %v1683_v15 }
 0x858   :  { %v1686_v17 = vadd.f32 %v1685_v20, %v1684_v22 }
 0x85a   :  { %v1693_v23 = vsel %vm1692_vm2, %v1686_v17, %v1535_v44 }
 0x85b   :  { %v1694_v24 = vpack.c.bf16 %v1693_v23, %v1693_v23 }
 0x85d   :  { %2187 = vmatmul.mubr.msk.bf16.vlgmr.msra.gmra.mrb[60].mxu0 %vm93_vm0, %v1694_v24 }
 0x930   :  { %v1755_v25 = vpop.f32.mrb[60].mxu0 }
 0x931   :  { %v1756_v26 = vadd.f32 %v1857_v39, %v1755_v25  ;;  %v2188_v27 = vpop.f32.mrb[61].mxu0 }
 0x932   :  { %v1758_v19 = vpop.f32.mrb[62].mxu0 }
 0x933   :  { %1761 = vst [vmem:[#allocation8] sm:$0xff] %v1756_v26  ;;  %v2189_v28 = vpop.f32.mrb[63].mxu0 }
 0x934   :  { %2334 = shalt.err (!%p2331_p12)
}
 0x935   :  { %s2335_s6 = scalar_lea.hbm %s2740_s7, 128 }
 0x936   :  { %p2336_p13 = scmp.ne.s32.totalorder %s2740_s7, %s2335_s6  ;;  %p2339_p0 = scmp.lt.u32.totalorder %s2335_s6, %s2740_s7 }
 0x938   :  { %p2341_p1 = pnand %p2339_p0, %p2336_p13 }
 0x93a   :  { %2344 = shalt.err (!%p2341_p1)
}
 0x93b   :  { %1771 = dma.vmem_to_hbm [thread:$0]  %s1769_s22, 128, %s2740_s7, [#allocation7]  }
 0x93c   :  { %2347 = dma.done.wait [#allocation7], 128  }
 0x93d   :  { %2348 = vsyncadd [#allocation7], 4294967168 }
 0x93e   :  { %1775 = vsyncpa [#allocation6], 1 }
 0x93f   :  { %1776 = vsyncpa [#allocation7], 1 }

</bundles_post_ra>
